<compile_context>
chip_gen: v6e
topology: v6e:2x2x1
jax: 0.10.0
libtpu: 0.0.40
codegen_flags: <defaults>
</compile_context>

<pallas_src>
import functools

import jax
import jax.numpy as jnp
from jax.experimental import pallas as pl
from jax.experimental.pallas import tpu as pltpu


def _round_up(x, m):
    return (x + m - 1) // m * m


def _silu(h):
    return h * jax.nn.sigmoid(h)


# ----------------------------------------------------------------------------
# One-time parameter preparation (outside the per-call hot path)
# ----------------------------------------------------------------------------
def _shelf_pack(sizes, row_align, col_align):
    """Simple shelf packer for (rows, cols) rectangles.

    Returns (offsets, n_rows, n_cols) with every row offset a multiple of
    row_align and every column offset a multiple of col_align. Avoids the
    old "pad every layer to max(out)" inflation.
    """
    rpad = [_round_up(r, row_align) for r, _ in sizes]
    cpad = [_round_up(c, col_align) for _, c in sizes]
    slab_w = max(cpad)
    order = sorted(range(len(sizes)), key=lambda k: -rpad[k])
    offs = [None] * len(sizes)
    y, x, shelf_h = 0, 0, 0
    for k in order:
        if x + cpad[k] > slab_w:
            y += shelf_h
            x, shelf_h = 0, 0
        offs[k] = (y, x)
        x += cpad[k]
        shelf_h = max(shelf_h, rpad[k])
    n_rows = _round_up(y + shelf_h, row_align)
    return offs, n_rows, slab_w


def prepare_vae_params(params, *, latent_dim, weight_dtype=jnp.bfloat16):
    """Pack all layer weights into one bf16 slab and all biases into one f32 slab.

    Returns (w_slab, b_slab, layout, split_head). layout is a static tuple of
    (in_dim, out_dim, row_off, col_off, bias_off) per layer in execution order:
      enc0, enc1, enc2, head (or head_mu, head_logvar), dec0, dec1, dec2, dec3
    """
    enc_ws, enc_bs, dec_ws, dec_bs = params
    split_head = 2 * latent_dim > 128      # keep one fused head matmul otherwise

    layers = []  # (W_t [in, out], b [out])
    n_enc = len(enc_ws)
    for i, (W, b) in enumerate(zip(enc_ws, enc_bs)):
        Wt = W.T
        if i == n_enc - 1 and split_head:
            layers.append((Wt[:, :latent_dim], b[:latent_dim]))
            layers.append((Wt[:, latent_dim:], b[latent_dim:]))
        else:
            layers.append((Wt, b))
    for W, b in zip(dec_ws, dec_bs):
        layers.append((W.T, b))

    in_dims = [int(w.shape[0]) for w, _ in layers]
    out_dims = [int(w.shape[1]) for w, _ in layers]

    itemsize = jnp.dtype(weight_dtype).itemsize
    row_align = 8 * max(1, 4 // itemsize)   # 8 for f32, 16 for bf16, 32 for int8
    col_align = 128

    offs, n_rows, n_cols = _shelf_pack(
        list(zip(in_dims, out_dims)), row_align, col_align)

    w_slab = jnp.zeros((n_rows, n_cols), weight_dtype)
    for (W, _), (ro, co) in zip(layers, offs):
        w_slab = w_slab.at[ro:ro + W.shape[0], co:co + W.shape[1]].set(
            W.astype(weight_dtype))

    # Lane-aligned bias slab: each layer's bias starts at a 128-multiple lane.
    b_offs, c = [], 0
    for d in out_dims:
        b_offs.append(c)
        c += _round_up(d, col_align)
    b_slab = jnp.zeros((1, _round_up(c, col_align)), jnp.float32)
    for (_, b), bo in zip(layers, b_offs):
        b_slab = b_slab.at[0, bo:bo + b.shape[0]].set(b.astype(jnp.float32))

    layout = tuple((din, dout, int(ro), int(co), int(bo))
                   for din, dout, (ro, co), bo
                   in zip(in_dims, out_dims, offs, b_offs))
    return w_slab, b_slab, layout, split_head


# ----------------------------------------------------------------------------
# Pallas kernel
# ----------------------------------------------------------------------------
def vae_kernel(xin_ref, w_ref, b_ref, out_ref,
               *, layout, input_dim, latent_dim, noise_col, out_cols,
               split_head, eps):
    def dense(h, idx):
        din, dout, ro, co, bo = layout[idx]        # static python ints
        w = w_ref[ro:ro + din, co:co + dout]       # (16,128)-aligned start
        b = b_ref[0:1, bo:bo + dout]               # lane-aligned start
        acc = jnp.dot(h.astype(w_ref.dtype), w,
                      preferred_element_type=jnp.float32)
        return acc + b

    x = xin_ref[:, 0:input_dim]
    noise = xin_ref[:, noise_col:noise_col + latent_dim]

    # ---- encoder: Linear -> SiLU (x3), then mu / logvar head(s) ----
    h = _silu(dense(x, 0))
    h = _silu(dense(h, 1))
    h = _silu(dense(h, 2))
    if split_head:
        mu = dense(h, 3)
        logvar = dense(h, 4)
        dec = 5
    else:
        head = dense(h, 3)                  # single matmul, shared LHS
        mu = head[:, 0:latent_dim]
        logvar = head[:, latent_dim:2 * latent_dim]
        dec = 4

    # ---- scale = softplus(logvar) + eps ; reparameterize ----
    scale = jax.nn.softplus(logvar) + eps
    z = mu + scale * noise

    # ---- decoder: Linear -> SiLU (x3) -> Linear -> Sigmoid ----
    d = _silu(dense(z, dec))
    d = _silu(dense(d, dec + 1))
    d = _silu(dense(d, dec + 2))
    recon = jax.nn.sigmoid(dense(d, dec + 3))

    # ---- lane-aligned per-piece stores into the packed output slab ----
    out_ref[...] = jnp.zeros(out_ref.shape, out_ref.dtype)   # deterministic pad
    o_rec, o_mu, o_sc, o_z = out_cols
    out_ref[:, o_rec:o_rec + input_dim] = recon
    out_ref[:, o_mu:o_mu + latent_dim] = mu
    out_ref[:, o_sc:o_sc + latent_dim] = scale
    out_ref[:, o_z:o_z + latent_dim] = z


# ----------------------------------------------------------------------------
# Wrapper
# ----------------------------------------------------------------------------
def vae_forward(x, noise, prepared, *, eps=1e-8, tile_b=None):
    """Run the VAE forward pass. Returns (recon_x, mu, scale, z)."""
    w_slab, b_slab, layout, split_head = prepared
    B, input_dim = x.shape
    latent_dim = noise.shape[1]

    # tile_b: one grid step for small batches (grid is a serial loop per TC),
    # 256 for large batches to fill the 256-wide MXU on v6e/v7x.
    if tile_b is None:
        tile_b = _round_up(B, 8) if B <= 512 else 256
    tile_b = _round_up(tile_b, 8)
    Bp = _round_up(B, tile_b)

    # Pack x and noise into one lane-dense input slab at 128-aligned offsets.
    x_w = _round_up(input_dim, 128)
    noise_col = x_w
    in_w = x_w + _round_up(latent_dim, 128)
    xin = jnp.zeros((Bp, in_w), jnp.float32)
    xin = xin.at[:B, :input_dim].set(x.astype(jnp.float32))
    xin = xin.at[:B, noise_col:noise_col + latent_dim].set(
        noise.astype(jnp.float32))

    # Output slab layout: [recon | mu | scale | z], each at a 128-aligned col.
    lat_w = _round_up(latent_dim, 128)
    o_rec, o_mu = 0, x_w
    o_sc, o_z = o_mu + lat_w, o_mu + 2 * lat_w
    out_w = o_mu + 3 * lat_w
    out_cols = (o_rec, o_mu, o_sc, o_z)

    grid = (Bp // tile_b,)
    kernel = functools.partial(
        vae_kernel, layout=layout, input_dim=input_dim, latent_dim=latent_dim,
        noise_col=noise_col, out_cols=out_cols, split_head=split_head, eps=eps)

    # VMEM budget: slab(s) + double-buffered activation tiles + temps, with headroom.
    w_bytes = w_slab.size * jnp.dtype(w_slab.dtype).itemsize
    b_bytes = b_slab.size * 4
    max_w = max([o for _, o, _, _, _ in layout] + [in_w, out_w])
    need = (2 * w_bytes + 2 * b_bytes
            + 2 * tile_b * (in_w + out_w) * 4
            + 6 * tile_b * max_w * 4)
    vmem_limit = int(min(max(2 * need, 32 * 1024 * 1024), 112 * 1024 * 1024))

    def build_and_run(single_buffer_slabs):
        def slab_spec(shape):
            if single_buffer_slabs:
                # Grid-invariant resident slab: no need for double buffering.
                return pl.BlockSpec(shape, lambda i: (0, 0),
                                    pipeline_mode=pl.Buffered(1))
            return pl.BlockSpec(shape, lambda i: (0, 0))

        return pl.pallas_call(
            kernel,
            out_shape=jax.ShapeDtypeStruct((Bp, out_w), jnp.float32),
            grid_spec=pltpu.PrefetchScalarGridSpec(
                num_scalar_prefetch=0,
                grid=grid,
                in_specs=[
                    pl.BlockSpec((tile_b, in_w), lambda i: (i, 0)),  # x|noise
                    slab_spec(w_slab.shape),                         # resident W
                    slab_spec(b_slab.shape),                         # resident b
                ],
                out_specs=pl.BlockSpec((tile_b, out_w), lambda i: (i, 0)),
            ),
            compiler_params=pltpu.CompilerParams(
                dimension_semantics=("parallel",),
                vmem_limit_bytes=vmem_limit),
        )(xin, w_slab, b_slab)

    try:
        packed = build_and_run(True)
    except Exception:
        # Fallback: default (double-buffered) resident slabs if single
        # buffering is rejected by this JAX/Mosaic version.
        packed = build_and_run(False)

    recon = packed[:B, o_rec:o_rec + input_dim]
    mu = packed[:B, o_mu:o_mu + latent_dim]
    scale = packed[:B, o_sc:o_sc + latent_dim]
    z = packed[:B, o_z:o_z + latent_dim]
    return recon, mu, scale, z


# ----------------------------------------------------------------------------
# Deterministic parameter init (PyTorch nn.Linear default: U(-1/sqrt(in), 1/sqrt(in)))
# ----------------------------------------------------------------------------
def init_linear(key, in_dim, out_dim):
    kw, kb = jax.random.split(key)
    bound = 1.0 / jnp.sqrt(in_dim)
    W = jax.random.uniform(kw, (out_dim, in_dim), jnp.float32, -bound, bound)
    b = jax.random.uniform(kb, (out_dim,), jnp.float32, -bound, bound)
    return W, b


def init_vae_params(key, input_dim, hidden_dim, latent_dim):
    dims_enc = [
        (input_dim, hidden_dim),
        (hidden_dim, hidden_dim // 2),
        (hidden_dim // 2, hidden_dim // 4),
        (hidden_dim // 4, 2 * latent_dim),
    ]
    dims_dec = [
        (latent_dim, hidden_dim // 4),
        (hidden_dim // 4, hidden_dim // 2),
        (hidden_dim // 2, hidden_dim),
        (hidden_dim, input_dim),
    ]
    keys = jax.random.split(key, len(dims_enc) + len(dims_dec))
    enc_ws, enc_bs, dec_ws, dec_bs = [], [], [], []
    for k, (i, o) in zip(keys[:4], dims_enc):
        W, b = init_linear(k, i, o)
        enc_ws.append(W)
        enc_bs.append(b)
    for k, (i, o) in zip(keys[4:], dims_dec):
        W, b = init_linear(k, i, o)
        dec_ws.append(W)
        dec_bs.append(b)
    return enc_ws, enc_bs, dec_ws, dec_bs


# ----------------------------------------------------------------------------
# Pure-JAX reference (same bf16 weight quantization, f32 accumulation)
# ----------------------------------------------------------------------------
def vae_ref(x, noise, params, *, eps=1e-8, weight_dtype=jnp.bfloat16):
    enc_ws, enc_bs, dec_ws, dec_bs = params

    def dense(h, W, b):
        Wq = W.astype(weight_dtype)
        return jnp.dot(h.astype(weight_dtype), Wq.T,
                       preferred_element_type=jnp.float32) + b

    h = x
    for i, (W, b) in enumerate(zip(enc_ws, enc_bs)):
        h = dense(h, W, b)
        if i < 3:
            h = h * jax.nn.sigmoid(h)
    latent_dim = h.shape[-1] // 2
    mu, logvar = h[:, :latent_dim], h[:, latent_dim:]
    scale = jax.nn.softplus(logvar) + eps
    z = mu + scale * noise
    d = z
    for i, (W, b) in enumerate(zip(dec_ws, dec_bs)):
        d = dense(d, W, b)
        if i < 3:
            d = d * jax.nn.sigmoid(d)
    recon = jax.nn.sigmoid(d)
    return recon, mu, scale, z


# ----------------------------------------------------------------------------
if __name__ == "__main__":
    # small shapes consistent with the module
    batch = 16
    input_dim = 64
    hidden_dim = 32
    latent_dim = 8

    key = jax.random.PRNGKey(0)
    k_x, k_noise, k_params = jax.random.split(key, 3)

    x = jax.random.uniform(k_x, (batch, input_dim), jnp.float32)
    # standard-normal noise for the reparameterization trick (rsample)
    noise = jax.random.normal(k_noise, (batch, latent_dim), jnp.float32)
    params = init_vae_params(k_params, input_dim, hidden_dim, latent_dim)

    # one-time packing of weights/biases into bf16/f32 slabs
    prepared = prepare_vae_params(params, latent_dim=latent_dim)

    # default: single grid step (best for small batch)
    outs = vae_forward(x, noise, prepared)
    jax.block_until_ready(outs)

    # also exercise the multi-tile pipelined path (grid=(2,))
    outs_tiled = vae_forward(x, noise, prepared, tile_b=8)
    jax.block_until_ready(outs_tiled)

    # sanity check against pure-JAX reference (same bf16 weight rounding)
    refs = vae_ref(x, noise, params)
    names = ("recon", "mu", "scale", "z")
    for name, a, r in zip(names, outs, refs):
        assert jnp.allclose(a, r, atol=1e-4, rtol=1e-4), f"{name} mismatch"
    for name, a, r in zip(names, outs_tiled, refs):
        assert jnp.allclose(a, r, atol=1e-4, rtol=1e-4), f"{name} mismatch (tiled)"

    print("KERNEL_OK")
</pallas_src>

<mosaic_0001>
module attributes {stable_mosaic.version = 11 : i64} {
  func.func @vae_kernel(%arg0: i32, %arg1: memref<16x256xf32, #tpu.memory_space<vmem>>, %arg2: memref<208x128xbf16, #tpu.memory_space<vmem>>, %arg3: memref<1x1024xf32, #tpu.memory_space<vmem>>, %arg4: memref<16x512xf32, #tpu.memory_space<vmem>>) attributes {dimension_semantics = [#tpu.dimension_semantics<parallel>], iteration_bounds = array<i64: 1>, scalar_prefetch = 0 : i64, scratch_operands = 0 : i64, tpu.core_type = #tpu.core_type<tc>, window_params = [{transform_indices = @transform_0, window_bounds = array<i64: 16, 256>}, {pipeline_mode = #tpu.pipeline_mode<synchronous>, transform_indices = @transform_1, window_bounds = array<i64: 208, 128>}, {pipeline_mode = #tpu.pipeline_mode<synchronous>, transform_indices = @transform_2, window_bounds = array<i64: 1, 1024>}, {transform_indices = @transform_3, window_bounds = array<i64: 16, 512>}]} {
    %c0 = arith.constant 0 : index
    %c0_0 = arith.constant 0 : index
    %0 = vector.load %arg1[%c0, %c0_0] : memref<16x256xf32, #tpu.memory_space<vmem>>, vector<16x64xf32>
    %c0_1 = arith.constant 0 : index
    %c128 = arith.constant 128 : index
    %1 = vector.load %arg1[%c0_1, %c128] : memref<16x256xf32, #tpu.memory_space<vmem>>, vector<16x8xf32>
    %c0_2 = arith.constant 0 : index
    %c0_3 = arith.constant 0 : index
    %2 = vector.load %arg2[%c0_2, %c0_3] : memref<208x128xbf16, #tpu.memory_space<vmem>>, vector<64x32xbf16>
    %c0_4 = arith.constant 0 : index
    %c0_5 = arith.constant 0 : index
    %3 = vector.load %arg3[%c0_4, %c0_5] : memref<1x1024xf32, #tpu.memory_space<vmem>>, vector<1x32xf32>
    %4 = arith.truncf %0 : vector<16x64xf32> to vector<16x64xbf16>
    %cst = arith.constant dense<0.000000e+00> : vector<16x32xf32>
    %5 = tpu.matmul %4, %2, %cst {dimension_numbers = #tpu.dot_dimension_numbers<[1], [0], [0], [1], [0, 0, 1, 1], [], []>} : vector<16x64xbf16>, vector<64x32xbf16>, vector<16x32xf32> -> vector<16x32xf32>
    %6 = vector.broadcast %3 : vector<1x32xf32> to vector<16x32xf32>
    %7 = arith.addf %5, %6 : vector<16x32xf32>
    %8 = arith.negf %7 : vector<16x32xf32>
    %9 = math.exp %8 : vector<16x32xf32>
    %cst_6 = arith.constant 1.000000e+00 : f32
    %10 = vector.broadcast %cst_6 : f32 to vector<16x32xf32>
    %11 = arith.addf %10, %9 : vector<16x32xf32>
    %12 = arith.divf %10, %11 : vector<16x32xf32>
    %13 = arith.mulf %7, %12 : vector<16x32xf32>
    %c64 = arith.constant 64 : index
    %c0_7 = arith.constant 0 : index
    %14 = vector.load %arg2[%c64, %c0_7] : memref<208x128xbf16, #tpu.memory_space<vmem>>, vector<32x16xbf16>
    %c0_8 = arith.constant 0 : index
    %c128_9 = arith.constant 128 : index
    %15 = vector.load %arg3[%c0_8, %c128_9] : memref<1x1024xf32, #tpu.memory_space<vmem>>, vector<1x16xf32>
    %16 = arith.truncf %13 : vector<16x32xf32> to vector<16x32xbf16>
    %cst_10 = arith.constant dense<0.000000e+00> : vector<16x16xf32>
    %17 = tpu.matmul %16, %14, %cst_10 {dimension_numbers = #tpu.dot_dimension_numbers<[1], [0], [0], [1], [0, 0, 1, 1], [], []>} : vector<16x32xbf16>, vector<32x16xbf16>, vector<16x16xf32> -> vector<16x16xf32>
    %18 = vector.broadcast %15 : vector<1x16xf32> to vector<16x16xf32>
    %19 = arith.addf %17, %18 : vector<16x16xf32>
    %20 = arith.negf %19 : vector<16x16xf32>
    %21 = math.exp %20 : vector<16x16xf32>
    %cst_11 = arith.constant 1.000000e+00 : f32
    %22 = vector.broadcast %cst_11 : f32 to vector<16x16xf32>
    %23 = arith.addf %22, %21 : vector<16x16xf32>
    %24 = arith.divf %22, %23 : vector<16x16xf32>
    %25 = arith.mulf %19, %24 : vector<16x16xf32>
    %c128_12 = arith.constant 128 : index
    %c0_13 = arith.constant 0 : index
    %26 = vector.load %arg2[%c128_12, %c0_13] : memref<208x128xbf16, #tpu.memory_space<vmem>>, vector<16x8xbf16>
    %c0_14 = arith.constant 0 : index
    %c256 = arith.constant 256 : index
    %27 = vector.load %arg3[%c0_14, %c256] : memref<1x1024xf32, #tpu.memory_space<vmem>>, vector<1x8xf32>
    %28 = arith.truncf %25 : vector<16x16xf32> to vector<16x16xbf16>
    %cst_15 = arith.constant dense<0.000000e+00> : vector<16x8xf32>
    %29 = tpu.matmul %28, %26, %cst_15 {dimension_numbers = #tpu.dot_dimension_numbers<[1], [0], [0], [1], [0, 0, 1, 1], [], []>} : vector<16x16xbf16>, vector<16x8xbf16>, vector<16x8xf32> -> vector<16x8xf32>
    %30 = vector.broadcast %27 : vector<1x8xf32> to vector<16x8xf32>
    %31 = arith.addf %29, %30 : vector<16x8xf32>
    %32 = arith.negf %31 : vector<16x8xf32>
    %33 = math.exp %32 : vector<16x8xf32>
    %cst_16 = arith.constant 1.000000e+00 : f32
    %34 = vector.broadcast %cst_16 : f32 to vector<16x8xf32>
    %35 = arith.addf %34, %33 : vector<16x8xf32>
    %36 = arith.divf %34, %35 : vector<16x8xf32>
    %37 = arith.mulf %31, %36 : vector<16x8xf32>
    %c144 = arith.constant 144 : index
    %c0_17 = arith.constant 0 : index
    %38 = vector.load %arg2[%c144, %c0_17] : memref<208x128xbf16, #tpu.memory_space<vmem>>, vector<8x16xbf16>
    %c0_18 = arith.constant 0 : index
    %c384 = arith.constant 384 : index
    %39 = vector.load %arg3[%c0_18, %c384] : memref<1x1024xf32, #tpu.memory_space<vmem>>, vector<1x16xf32>
    %40 = arith.truncf %37 : vector<16x8xf32> to vector<16x8xbf16>
    %cst_19 = arith.constant dense<0.000000e+00> : vector<16x16xf32>
    %41 = tpu.matmul %40, %38, %cst_19 {dimension_numbers = #tpu.dot_dimension_numbers<[1], [0], [0], [1], [0, 0, 1, 1], [], []>} : vector<16x8xbf16>, vector<8x16xbf16>, vector<16x16xf32> -> vector<16x16xf32>
    %42 = vector.broadcast %39 : vector<1x16xf32> to vector<16x16xf32>
    %43 = arith.addf %41, %42 : vector<16x16xf32>
    %44 = vector.extract_strided_slice %43 {offsets = [0, 0], sizes = [16, 8], strides = [1, 1]} : vector<16x16xf32> to vector<16x8xf32>
    %45 = vector.extract_strided_slice %43 {offsets = [0, 8], sizes = [16, 8], strides = [1, 1]} : vector<16x16xf32> to vector<16x8xf32>
    %cst_20 = arith.constant 0.000000e+00 : f32
    %46 = vector.broadcast %cst_20 : f32 to vector<16x8xf32>
    %47 = arith.maximumf %45, %46 : vector<16x8xf32>
    %48 = vector.broadcast %cst_20 : f32 to vector<16x8xf32>
    %49 = arith.subf %45, %48 : vector<16x8xf32>
    %50 = arith.cmpf one, %49, %49 : vector<16x8xf32>
    %51 = vector.broadcast %cst_20 : f32 to vector<16x8xf32>
    %52 = arith.addf %45, %51 : vector<16x8xf32>
    %53 = math.absf %49 : vector<16x8xf32>
    %cst_21 = arith.constant 0.000000e+00 : f32
    %54 = vector.broadcast %cst_21 : f32 to vector<16x8xf32>
    %55 = arith.subf %54, %53 : vector<16x8xf32>
    %56 = math.exp %55 : vector<16x8xf32>
    %57 = math.log1p %56 : vector<16x8xf32>
    %58 = arith.addf %47, %57 : vector<16x8xf32>
    %59 = arith.select %50, %52, %58 : vector<16x8xi1>, vector<16x8xf32>
    %cst_22 = arith.constant 9.99999993E-9 : f32
    %60 = vector.broadcast %cst_22 : f32 to vector<16x8xf32>
    %61 = arith.addf %59, %60 : vector<16x8xf32>
    %62 = arith.mulf %61, %1 : vector<16x8xf32>
    %63 = arith.addf %44, %62 : vector<16x8xf32>
    %c160 = arith.constant 160 : index
    %c0_23 = arith.constant 0 : index
    %64 = vector.load %arg2[%c160, %c0_23] : memref<208x128xbf16, #tpu.memory_space<vmem>>, vector<8x8xbf16>
    %c0_24 = arith.constant 0 : index
    %c512 = arith.constant 512 : index
    %65 = vector.load %arg3[%c0_24, %c512] : memref<1x1024xf32, #tpu.memory_space<vmem>>, vector<1x8xf32>
    %66 = arith.truncf %63 : vector<16x8xf32> to vector<16x8xbf16>
    %cst_25 = arith.constant dense<0.000000e+00> : vector<16x8xf32>
    %67 = tpu.matmul %66, %64, %cst_25 {dimension_numbers = #tpu.dot_dimension_numbers<[1], [0], [0], [1], [0, 0, 1, 1], [], []>} : vector<16x8xbf16>, vector<8x8xbf16>, vector<16x8xf32> -> vector<16x8xf32>
    %68 = vector.broadcast %65 : vector<1x8xf32> to vector<16x8xf32>
    %69 = arith.addf %67, %68 : vector<16x8xf32>
    %70 = arith.negf %69 : vector<16x8xf32>
    %71 = math.exp %70 : vector<16x8xf32>
    %cst_26 = arith.constant 1.000000e+00 : f32
    %72 = vector.broadcast %cst_26 : f32 to vector<16x8xf32>
    %73 = arith.addf %72, %71 : vector<16x8xf32>
    %74 = arith.divf %72, %73 : vector<16x8xf32>
    %75 = arith.mulf %69, %74 : vector<16x8xf32>
    %c176 = arith.constant 176 : index
    %c0_27 = arith.constant 0 : index
    %76 = vector.load %arg2[%c176, %c0_27] : memref<208x128xbf16, #tpu.memory_space<vmem>>, vector<8x16xbf16>
    %c0_28 = arith.constant 0 : index
    %c640 = arith.constant 640 : index
    %77 = vector.load %arg3[%c0_28, %c640] : memref<1x1024xf32, #tpu.memory_space<vmem>>, vector<1x16xf32>
    %78 = arith.truncf %75 : vector<16x8xf32> to vector<16x8xbf16>
    %cst_29 = arith.constant dense<0.000000e+00> : vector<16x16xf32>
    %79 = tpu.matmul %78, %76, %cst_29 {dimension_numbers = #tpu.dot_dimension_numbers<[1], [0], [0], [1], [0, 0, 1, 1], [], []>} : vector<16x8xbf16>, vector<8x16xbf16>, vector<16x16xf32> -> vector<16x16xf32>
    %80 = vector.broadcast %77 : vector<1x16xf32> to vector<16x16xf32>
    %81 = arith.addf %79, %80 : vector<16x16xf32>
    %82 = arith.negf %81 : vector<16x16xf32>
    %83 = math.exp %82 : vector<16x16xf32>
    %cst_30 = arith.constant 1.000000e+00 : f32
    %84 = vector.broadcast %cst_30 : f32 to vector<16x16xf32>
    %85 = arith.addf %84, %83 : vector<16x16xf32>
    %86 = arith.divf %84, %85 : vector<16x16xf32>
    %87 = arith.mulf %81, %86 : vector<16x16xf32>
    %c192 = arith.constant 192 : index
    %c0_31 = arith.constant 0 : index
    %88 = vector.load %arg2[%c192, %c0_31] : memref<208x128xbf16, #tpu.memory_space<vmem>>, vector<16x32xbf16>
    %c0_32 = arith.constant 0 : index
    %c768 = arith.constant 768 : index
    %89 = vector.load %arg3[%c0_32, %c768] : memref<1x1024xf32, #tpu.memory_space<vmem>>, vector<1x32xf32>
    %90 = arith.truncf %87 : vector<16x16xf32> to vector<16x16xbf16>
    %cst_33 = arith.constant dense<0.000000e+00> : vector<16x32xf32>
    %91 = tpu.matmul %90, %88, %cst_33 {dimension_numbers = #tpu.dot_dimension_numbers<[1], [0], [0], [1], [0, 0, 1, 1], [], []>} : vector<16x16xbf16>, vector<16x32xbf16>, vector<16x32xf32> -> vector<16x32xf32>
    %92 = vector.broadcast %89 : vector<1x32xf32> to vector<16x32xf32>
    %93 = arith.addf %91, %92 : vector<16x32xf32>
    %94 = arith.negf %93 : vector<16x32xf32>
    %95 = math.exp %94 : vector<16x32xf32>
    %cst_34 = arith.constant 1.000000e+00 : f32
    %96 = vector.broadcast %cst_34 : f32 to vector<16x32xf32>
    %97 = arith.addf %96, %95 : vector<16x32xf32>
    %98 = arith.divf %96, %97 : vector<16x32xf32>
    %99 = arith.mulf %93, %98 : vector<16x32xf32>
    %c96 = arith.constant 96 : index
    %c0_35 = arith.constant 0 : index
    %100 = vector.load %arg2[%c96, %c0_35] : memref<208x128xbf16, #tpu.memory_space<vmem>>, vector<32x64xbf16>
    %c0_36 = arith.constant 0 : index
    %c896 = arith.constant 896 : index
    %101 = vector.load %arg3[%c0_36, %c896] : memref<1x1024xf32, #tpu.memory_space<vmem>>, vector<1x64xf32>
    %102 = arith.truncf %99 : vector<16x32xf32> to vector<16x32xbf16>
    %cst_37 = arith.constant dense<0.000000e+00> : vector<16x64xf32>
    %103 = tpu.matmul %102, %100, %cst_37 {dimension_numbers = #tpu.dot_dimension_numbers<[1], [0], [0], [1], [0, 0, 1, 1], [], []>} : vector<16x32xbf16>, vector<32x64xbf16>, vector<16x64xf32> -> vector<16x64xf32>
    %104 = vector.broadcast %101 : vector<1x64xf32> to vector<16x64xf32>
    %105 = arith.addf %103, %104 : vector<16x64xf32>
    %106 = arith.negf %105 : vector<16x64xf32>
    %107 = math.exp %106 : vector<16x64xf32>
    %cst_38 = arith.constant 1.000000e+00 : f32
    %108 = vector.broadcast %cst_38 : f32 to vector<16x64xf32>
    %109 = arith.addf %108, %107 : vector<16x64xf32>
    %110 = arith.divf %108, %109 : vector<16x64xf32>
    %cst_39 = arith.constant 0.000000e+00 : f32
    %111 = vector.broadcast %cst_39 : f32 to vector<16x512xf32>
    %c0_40 = arith.constant 0 : index
    %c0_41 = arith.constant 0 : index
    %112 = vector.load %arg4[%c0_40, %c0_41] : memref<16x512xf32, #tpu.memory_space<vmem>>, vector<16x512xf32>
    tpu.vector_store %arg4[%c0_40, %c0_41], %111 {strides = array<i32>} : memref<16x512xf32, #tpu.memory_space<vmem>>, vector<16x512xf32>,
    %c0_42 = arith.constant 0 : index
    %c0_43 = arith.constant 0 : index
    %113 = vector.load %arg4[%c0_42, %c0_43] : memref<16x512xf32, #tpu.memory_space<vmem>>, vector<16x64xf32>
    tpu.vector_store %arg4[%c0_42, %c0_43], %110 {strides = array<i32>} : memref<16x512xf32, #tpu.memory_space<vmem>>, vector<16x64xf32>,
    %c0_44 = arith.constant 0 : index
    %c128_45 = arith.constant 128 : index
    %114 = vector.load %arg4[%c0_44, %c128_45] : memref<16x512xf32, #tpu.memory_space<vmem>>, vector<16x8xf32>
    tpu.vector_store %arg4[%c0_44, %c128_45], %44 {strides = array<i32>} : memref<16x512xf32, #tpu.memory_space<vmem>>, vector<16x8xf32>,
    %c0_46 = arith.constant 0 : index
    %c256_47 = arith.constant 256 : index
    %115 = vector.load %arg4[%c0_46, %c256_47] : memref<16x512xf32, #tpu.memory_space<vmem>>, vector<16x8xf32>
    tpu.vector_store %arg4[%c0_46, %c256_47], %61 {strides = array<i32>} : memref<16x512xf32, #tpu.memory_space<vmem>>, vector<16x8xf32>,
    %c0_48 = arith.constant 0 : index
    %c384_49 = arith.constant 384 : index
    %116 = vector.load %arg4[%c0_48, %c384_49] : memref<16x512xf32, #tpu.memory_space<vmem>>, vector<16x8xf32>
    tpu.vector_store %arg4[%c0_48, %c384_49], %63 {strides = array<i32>} : memref<16x512xf32, #tpu.memory_space<vmem>>, vector<16x8xf32>,
    return
  }
  func.func @transform_0(%arg0: i32) -> (i32, i32) {
    %c0_i32 = arith.constant 0 : i32
    %c0_i32_0 = arith.constant 0 : i32
    return %arg0, %c0_i32 : i32, i32
  }
  func.func @transform_1(%arg0: i32) -> (i32, i32) {
    %c0_i32 = arith.constant 0 : i32
    %c0_i32_0 = arith.constant 0 : i32
    %c0_i32_1 = arith.constant 0 : i32
    return %c0_i32, %c0_i32_0 : i32, i32
  }
  func.func @transform_2(%arg0: i32) -> (i32, i32) {
    %c0_i32 = arith.constant 0 : i32
    %c0_i32_0 = arith.constant 0 : i32
    %c0_i32_1 = arith.constant 0 : i32
    return %c0_i32, %c0_i32_0 : i32, i32
  }
  func.func @transform_3(%arg0: i32) -> (i32, i32) {
    %c0_i32 = arith.constant 0 : i32
    %c0_i32_0 = arith.constant 0 : i32
    return %arg0, %c0_i32 : i32, i32
  }
}

module attributes {stable_mosaic.version = 11 : i64} {
  func.func @vae_kernel(%arg0: i32, %arg1: memref<16x256xf32, #tpu.memory_space<vmem>>, %arg2: memref<208x128xbf16, #tpu.memory_space<vmem>>, %arg3: memref<1x1024xf32, #tpu.memory_space<vmem>>, %arg4: memref<16x512xf32, #tpu.memory_space<vmem>>) attributes {dimension_semantics = [#tpu.dimension_semantics<parallel>], iteration_bounds = array<i64: 1>, scalar_prefetch = 0 : i64, scratch_operands = 0 : i64, tpu.core_type = #tpu.core_type<tc>, window_params = [{transform_indices = @transform_0, window_bounds = array<i64: 16, 256>}, {pipeline_mode = #tpu.pipeline_mode<synchronous>, transform_indices = @transform_1, window_bounds = array<i64: 208, 128>}, {pipeline_mode = #tpu.pipeline_mode<synchronous>, transform_indices = @transform_2, window_bounds = array<i64: 1, 1024>}, {transform_indices = @transform_3, window_bounds = array<i64: 16, 512>}]} {
    %c0 = arith.constant 0 : index
    %c0_0 = arith.constant 0 : index
    %0 = vector.load %arg1[%c0, %c0_0] : memref<16x256xf32, #tpu.memory_space<vmem>>, vector<16x64xf32>
    %c0_1 = arith.constant 0 : index
    %c128 = arith.constant 128 : index
    %1 = vector.load %arg1[%c0_1, %c128] : memref<16x256xf32, #tpu.memory_space<vmem>>, vector<16x8xf32>
    %c0_2 = arith.constant 0 : index
    %c0_3 = arith.constant 0 : index
    %2 = vector.load %arg2[%c0_2, %c0_3] : memref<208x128xbf16, #tpu.memory_space<vmem>>, vector<64x32xbf16>
    %c0_4 = arith.constant 0 : index
    %c0_5 = arith.constant 0 : index
    %3 = vector.load %arg3[%c0_4, %c0_5] : memref<1x1024xf32, #tpu.memory_space<vmem>>, vector<1x32xf32>
    %4 = arith.truncf %0 : vector<16x64xf32> to vector<16x64xbf16>
    %cst = arith.constant dense<0.000000e+00> : vector<16x32xf32>
    %5 = tpu.matmul %4, %2, %cst {dimension_numbers = #tpu.dot_dimension_numbers<[1], [0], [0], [1], [0, 0, 1, 1], [], []>} : vector<16x64xbf16>, vector<64x32xbf16>, vector<16x32xf32> -> vector<16x32xf32>
    %6 = vector.broadcast %3 : vector<1x32xf32> to vector<16x32xf32>
    %7 = arith.addf %5, %6 : vector<16x32xf32>
    %8 = arith.negf %7 : vector<16x32xf32>
    %9 = math.exp %8 : vector<16x32xf32>
    %cst_6 = arith.constant 1.000000e+00 : f32
    %10 = vector.broadcast %cst_6 : f32 to vector<16x32xf32>
    %11 = arith.addf %10, %9 : vector<16x32xf32>
    %12 = arith.divf %10, %11 : vector<16x32xf32>
    %13 = arith.mulf %7, %12 : vector<16x32xf32>
    %c64 = arith.constant 64 : index
    %c0_7 = arith.constant 0 : index
    %14 = vector.load %arg2[%c64, %c0_7] : memref<208x128xbf16, #tpu.memory_space<vmem>>, vector<32x16xbf16>
    %c0_8 = arith.constant 0 : index
    %c128_9 = arith.constant 128 : index
    %15 = vector.load %arg3[%c0_8, %c128_9] : memref<1x1024xf32, #tpu.memory_space<vmem>>, vector<1x16xf32>
    %16 = arith.truncf %13 : vector<16x32xf32> to vector<16x32xbf16>
    %cst_10 = arith.constant dense<0.000000e+00> : vector<16x16xf32>
    %17 = tpu.matmul %16, %14, %cst_10 {dimension_numbers = #tpu.dot_dimension_numbers<[1], [0], [0], [1], [0, 0, 1, 1], [], []>} : vector<16x32xbf16>, vector<32x16xbf16>, vector<16x16xf32> -> vector<16x16xf32>
    %18 = vector.broadcast %15 : vector<1x16xf32> to vector<16x16xf32>
    %19 = arith.addf %17, %18 : vector<16x16xf32>
    %20 = arith.negf %19 : vector<16x16xf32>
    %21 = math.exp %20 : vector<16x16xf32>
    %cst_11 = arith.constant 1.000000e+00 : f32
    %22 = vector.broadcast %cst_11 : f32 to vector<16x16xf32>
    %23 = arith.addf %22, %21 : vector<16x16xf32>
    %24 = arith.divf %22, %23 : vector<16x16xf32>
    %25 = arith.mulf %19, %24 : vector<16x16xf32>
    %c128_12 = arith.constant 128 : index
    %c0_13 = arith.constant 0 : index
    %26 = vector.load %arg2[%c128_12, %c0_13] : memref<208x128xbf16, #tpu.memory_space<vmem>>, vector<16x8xbf16>
    %c0_14 = arith.constant 0 : index
    %c256 = arith.constant 256 : index
    %27 = vector.load %arg3[%c0_14, %c256] : memref<1x1024xf32, #tpu.memory_space<vmem>>, vector<1x8xf32>
    %28 = arith.truncf %25 : vector<16x16xf32> to vector<16x16xbf16>
    %cst_15 = arith.constant dense<0.000000e+00> : vector<16x8xf32>
    %29 = tpu.matmul %28, %26, %cst_15 {dimension_numbers = #tpu.dot_dimension_numbers<[1], [0], [0], [1], [0, 0, 1, 1], [], []>} : vector<16x16xbf16>, vector<16x8xbf16>, vector<16x8xf32> -> vector<16x8xf32>
    %30 = vector.broadcast %27 : vector<1x8xf32> to vector<16x8xf32>
    %31 = arith.addf %29, %30 : vector<16x8xf32>
    %32 = arith.negf %31 : vector<16x8xf32>
    %33 = math.exp %32 : vector<16x8xf32>
    %cst_16 = arith.constant 1.000000e+00 : f32
    %34 = vector.broadcast %cst_16 : f32 to vector<16x8xf32>
    %35 = arith.addf %34, %33 : vector<16x8xf32>
    %36 = arith.divf %34, %35 : vector<16x8xf32>
    %37 = arith.mulf %31, %36 : vector<16x8xf32>
    %c144 = arith.constant 144 : index
    %c0_17 = arith.constant 0 : index
    %38 = vector.load %arg2[%c144, %c0_17] : memref<208x128xbf16, #tpu.memory_space<vmem>>, vector<8x16xbf16>
    %c0_18 = arith.constant 0 : index
    %c384 = arith.constant 384 : index
    %39 = vector.load %arg3[%c0_18, %c384] : memref<1x1024xf32, #tpu.memory_space<vmem>>, vector<1x16xf32>
    %40 = arith.truncf %37 : vector<16x8xf32> to vector<16x8xbf16>
    %cst_19 = arith.constant dense<0.000000e+00> : vector<16x16xf32>
    %41 = tpu.matmul %40, %38, %cst_19 {dimension_numbers = #tpu.dot_dimension_numbers<[1], [0], [0], [1], [0, 0, 1, 1], [], []>} : vector<16x8xbf16>, vector<8x16xbf16>, vector<16x16xf32> -> vector<16x16xf32>
    %42 = vector.broadcast %39 : vector<1x16xf32> to vector<16x16xf32>
    %43 = arith.addf %41, %42 : vector<16x16xf32>
    %44 = vector.extract_strided_slice %43 {offsets = [0, 0], sizes = [16, 8], strides = [1, 1]} : vector<16x16xf32> to vector<16x8xf32>
    %45 = vector.extract_strided_slice %43 {offsets = [0, 8], sizes = [16, 8], strides = [1, 1]} : vector<16x16xf32> to vector<16x8xf32>
    %cst_20 = arith.constant 0.000000e+00 : f32
    %46 = vector.broadcast %cst_20 : f32 to vector<16x8xf32>
    %47 = arith.maximumf %45, %46 : vector<16x8xf32>
    %48 = vector.broadcast %cst_20 : f32 to vector<16x8xf32>
    %49 = arith.subf %45, %48 : vector<16x8xf32>
    %50 = arith.cmpf one, %49, %49 : vector<16x8xf32>
    %51 = vector.broadcast %cst_20 : f32 to vector<16x8xf32>
    %52 = arith.addf %45, %51 : vector<16x8xf32>
    %53 = math.absf %49 : vector<16x8xf32>
    %cst_21 = arith.constant 0.000000e+00 : f32
    %54 = vector.broadcast %cst_21 : f32 to vector<16x8xf32>
    %55 = arith.subf %54, %53 : vector<16x8xf32>
    %56 = math.exp %55 : vector<16x8xf32>
    %57 = math.log1p %56 : vector<16x8xf32>
    %58 = arith.addf %47, %57 : vector<16x8xf32>
    %59 = arith.select %50, %52, %58 : vector<16x8xi1>, vector<16x8xf32>
    %cst_22 = arith.constant 9.99999993E-9 : f32
    %60 = vector.broadcast %cst_22 : f32 to vector<16x8xf32>
    %61 = arith.addf %59, %60 : vector<16x8xf32>
    %62 = arith.mulf %61, %1 : vector<16x8xf32>
    %63 = arith.addf %44, %62 : vector<16x8xf32>
    %c160 = arith.constant 160 : index
    %c0_23 = arith.constant 0 : index
    %64 = vector.load %arg2[%c160, %c0_23] : memref<208x128xbf16, #tpu.memory_space<vmem>>, vector<8x8xbf16>
    %c0_24 = arith.constant 0 : index
    %c512 = arith.constant 512 : index
    %65 = vector.load %arg3[%c0_24, %c512] : memref<1x1024xf32, #tpu.memory_space<vmem>>, vector<1x8xf32>
    %66 = arith.truncf %63 : vector<16x8xf32> to vector<16x8xbf16>
    %cst_25 = arith.constant dense<0.000000e+00> : vector<16x8xf32>
    %67 = tpu.matmul %66, %64, %cst_25 {dimension_numbers = #tpu.dot_dimension_numbers<[1], [0], [0], [1], [0, 0, 1, 1], [], []>} : vector<16x8xbf16>, vector<8x8xbf16>, vector<16x8xf32> -> vector<16x8xf32>
    %68 = vector.broadcast %65 : vector<1x8xf32> to vector<16x8xf32>
    %69 = arith.addf %67, %68 : vector<16x8xf32>
    %70 = arith.negf %69 : vector<16x8xf32>
    %71 = math.exp %70 : vector<16x8xf32>
    %cst_26 = arith.constant 1.000000e+00 : f32
    %72 = vector.broadcast %cst_26 : f32 to vector<16x8xf32>
    %73 = arith.addf %72, %71 : vector<16x8xf32>
    %74 = arith.divf %72, %73 : vector<16x8xf32>
    %75 = arith.mulf %69, %74 : vector<16x8xf32>
    %c176 = arith.constant 176 : index
    %c0_27 = arith.constant 0 : index
    %76 = vector.load %arg2[%c176, %c0_27] : memref<208x128xbf16, #tpu.memory_space<vmem>>, vector<8x16xbf16>
    %c0_28 = arith.constant 0 : index
    %c640 = arith.constant 640 : index
    %77 = vector.load %arg3[%c0_28, %c640] : memref<1x1024xf32, #tpu.memory_space<vmem>>, vector<1x16xf32>
    %78 = arith.truncf %75 : vector<16x8xf32> to vector<16x8xbf16>
    %cst_29 = arith.constant dense<0.000000e+00> : vector<16x16xf32>
    %79 = tpu.matmul %78, %76, %cst_29 {dimension_numbers = #tpu.dot_dimension_numbers<[1], [0], [0], [1], [0, 0, 1, 1], [], []>} : vector<16x8xbf16>, vector<8x16xbf16>, vector<16x16xf32> -> vector<16x16xf32>
    %80 = vector.broadcast %77 : vector<1x16xf32> to vector<16x16xf32>
    %81 = arith.addf %79, %80 : vector<16x16xf32>
    %82 = arith.negf %81 : vector<16x16xf32>
    %83 = math.exp %82 : vector<16x16xf32>
    %cst_30 = arith.constant 1.000000e+00 : f32
    %84 = vector.broadcast %cst_30 : f32 to vector<16x16xf32>
    %85 = arith.addf %84, %83 : vector<16x16xf32>
    %86 = arith.divf %84, %85 : vector<16x16xf32>
    %87 = arith.mulf %81, %86 : vector<16x16xf32>
    %c192 = arith.constant 192 : index
    %c0_31 = arith.constant 0 : index
    %88 = vector.load %arg2[%c192, %c0_31] : memref<208x128xbf16, #tpu.memory_space<vmem>>, vector<16x32xbf16>
    %c0_32 = arith.constant 0 : index
    %c768 = arith.constant 768 : index
    %89 = vector.load %arg3[%c0_32, %c768] : memref<1x1024xf32, #tpu.memory_space<vmem>>, vector<1x32xf32>
    %90 = arith.truncf %87 : vector<16x16xf32> to vector<16x16xbf16>
    %cst_33 = arith.constant dense<0.000000e+00> : vector<16x32xf32>
    %91 = tpu.matmul %90, %88, %cst_33 {dimension_numbers = #tpu.dot_dimension_numbers<[1], [0], [0], [1], [0, 0, 1, 1], [], []>} : vector<16x16xbf16>, vector<16x32xbf16>, vector<16x32xf32> -> vector<16x32xf32>
    %92 = vector.broadcast %89 : vector<1x32xf32> to vector<16x32xf32>
    %93 = arith.addf %91, %92 : vector<16x32xf32>
    %94 = arith.negf %93 : vector<16x32xf32>
    %95 = math.exp %94 : vector<16x32xf32>
    %cst_34 = arith.constant 1.000000e+00 : f32
    %96 = vector.broadcast %cst_34 : f32 to vector<16x32xf32>
    %97 = arith.addf %96, %95 : vector<16x32xf32>
    %98 = arith.divf %96, %97 : vector<16x32xf32>
    %99 = arith.mulf %93, %98 : vector<16x32xf32>
    %c96 = arith.constant 96 : index
    %c0_35 = arith.constant 0 : index
    %100 = vector.load %arg2[%c96, %c0_35] : memref<208x128xbf16, #tpu.memory_space<vmem>>, vector<32x64xbf16>
    %c0_36 = arith.constant 0 : index
    %c896 = arith.constant 896 : index
    %101 = vector.load %arg3[%c0_36, %c896] : memref<1x1024xf32, #tpu.memory_space<vmem>>, vector<1x64xf32>
    %102 = arith.truncf %99 : vector<16x32xf32> to vector<16x32xbf16>
    %cst_37 = arith.constant dense<0.000000e+00> : vector<16x64xf32>
    %103 = tpu.matmul %102, %100, %cst_37 {dimension_numbers = #tpu.dot_dimension_numbers<[1], [0], [0], [1], [0, 0, 1, 1], [], []>} : vector<16x32xbf16>, vector<32x64xbf16>, vector<16x64xf32> -> vector<16x64xf32>
    %104 = vector.broadcast %101 : vector<1x64xf32> to vector<16x64xf32>
    %105 = arith.addf %103, %104 : vector<16x64xf32>
    %106 = arith.negf %105 : vector<16x64xf32>
    %107 = math.exp %106 : vector<16x64xf32>
    %cst_38 = arith.constant 1.000000e+00 : f32
    %108 = vector.broadcast %cst_38 : f32 to vector<16x64xf32>
    %109 = arith.addf %108, %107 : vector<16x64xf32>
    %110 = arith.divf %108, %109 : vector<16x64xf32>
    %cst_39 = arith.constant 0.000000e+00 : f32
    %111 = vector.broadcast %cst_39 : f32 to vector<16x512xf32>
    %c0_40 = arith.constant 0 : index
    %c0_41 = arith.constant 0 : index
    %112 = vector.load %arg4[%c0_40, %c0_41] : memref<16x512xf32, #tpu.memory_space<vmem>>, vector<16x512xf32>
    tpu.vector_store %arg4[%c0_40, %c0_41], %111 {strides = array<i32>} : memref<16x512xf32, #tpu.memory_space<vmem>>, vector<16x512xf32>,
    %c0_42 = arith.constant 0 : index
    %c0_43 = arith.constant 0 : index
    %113 = vector.load %arg4[%c0_42, %c0_43] : memref<16x512xf32, #tpu.memory_space<vmem>>, vector<16x64xf32>
    tpu.vector_store %arg4[%c0_42, %c0_43], %110 {strides = array<i32>} : memref<16x512xf32, #tpu.memory_space<vmem>>, vector<16x64xf32>,
    %c0_44 = arith.constant 0 : index
    %c128_45 = arith.constant 128 : index
    %114 = vector.load %arg4[%c0_44, %c128_45] : memref<16x512xf32, #tpu.memory_space<vmem>>, vector<16x8xf32>
    tpu.vector_store %arg4[%c0_44, %c128_45], %44 {strides = array<i32>} : memref<16x512xf32, #tpu.memory_space<vmem>>, vector<16x8xf32>,
    %c0_46 = arith.constant 0 : index
    %c256_47 = arith.constant 256 : index
    %115 = vector.load %arg4[%c0_46, %c256_47] : memref<16x512xf32, #tpu.memory_space<vmem>>, vector<16x8xf32>
    tpu.vector_store %arg4[%c0_46, %c256_47], %61 {strides = array<i32>} : memref<16x512xf32, #tpu.memory_space<vmem>>, vector<16x8xf32>,
    %c0_48 = arith.constant 0 : index
    %c384_49 = arith.constant 384 : index
    %116 = vector.load %arg4[%c0_48, %c384_49] : memref<16x512xf32, #tpu.memory_space<vmem>>, vector<16x8xf32>
    tpu.vector_store %arg4[%c0_48, %c384_49], %63 {strides = array<i32>} : memref<16x512xf32, #tpu.memory_space<vmem>>, vector<16x8xf32>,
    return
  }
  func.func @transform_0(%arg0: i32) -> (i32, i32) {
    %c0_i32 = arith.constant 0 : i32
    %c0_i32_0 = arith.constant 0 : i32
    return %arg0, %c0_i32 : i32, i32
  }
  func.func @transform_1(%arg0: i32) -> (i32, i32) {
    %c0_i32 = arith.constant 0 : i32
    %c0_i32_0 = arith.constant 0 : i32
    %c0_i32_1 = arith.constant 0 : i32
    return %c0_i32, %c0_i32_0 : i32, i32
  }
  func.func @transform_2(%arg0: i32) -> (i32, i32) {
    %c0_i32 = arith.constant 0 : i32
    %c0_i32_0 = arith.constant 0 : i32
    %c0_i32_1 = arith.constant 0 : i32
    return %c0_i32, %c0_i32_0 : i32, i32
  }
  func.func @transform_3(%arg0: i32) -> (i32, i32) {
    %c0_i32 = arith.constant 0 : i32
    %c0_i32_0 = arith.constant 0 : i32
    return %arg0, %c0_i32 : i32, i32
  }
}

</mosaic_0001>

<bundles_post_ra>
// kernel: tpu_custom_call.1
= control target key start
LH: loop header
LB: loop body
LE: loop exit
PB: predicated region body
PF: predicated region fallthrough
CT: control target
= control target key end

     0   :  { %8 = vsyncpa [#allocation3], 0  ;;  %s1172_s0 = inlined_call_operand.hbm [shape: f32[16,256], index: 0, kind: input, shape index: {}]   ;;  %s1173_s1 = inlined_call_operand.hbm [shape: bf16[208,128], index: 1, kind: input, shape index: {}]   ;;  %s1174_s2 = inlined_call_operand.hbm [shape: f32[1,1024], index: 2, kind: input, shape index: {}]   ;;  %s1175_s3 = inlined_call_operand.hbm [shape: f32[16,512], index: 3, kind: output, shape index: {}]  }
   0x1   :  { %9 = vsyncpa [#allocation6], 0 }
   0x2   :  { %10 = vsyncpa [#allocation4], 0  ;;  %s1061_s12 = smov [#allocation5]  }
   0x3   :  { %s28_s13 = sshll.u32 %s1061_s12, 4  ;;  %s29_s13 = int_to_ptr.vmem [resolvable:$true] %s28_s13 }
   0x4   :  { %s983_s14 = scalar_lea.vmem %s29_s13, 1664  ;;  %p988_p1 = scmp.lt.s32.totalorder %s29_s13, %s29_s13 }
   0x5   :  { %p984_p0 = scmp.ne.s32.totalorder %s29_s13, %s983_s14  ;;  %p989_p2 = scmp.lt.s32.totalorder %s983_s14, %s983_s14 }
   0x7   :  { %p990_p3 = por %p989_p2, %p988_p1 }
   0x9   :  { %p991_p4 = pnand %p990_p3, %p984_p0 }
   0xb   :  { %994 = shalt.err (!%p991_p4)
}
   0xc   :  { %s1062_s15 = smov 64   ;;  %s1063_s16 = smov 4  }
   0xd   :  { %34 = dma.hbm_to_vmem [thread:$0]  %s1173_s1, 1664, %s29_s13, [#allocation6], %s1062_s15, %s1062_s15, %s1063_s16  }
   0xe   :  { %s1064_s19 = smov [#allocation2]  }
   0xf   :  { %s16_s20 = sshll.u32 %s1064_s19, 4  ;;  %s17_s20 = int_to_ptr.vmem [resolvable:$true] %s16_s20 }
  0x10   :  { %s1003_s21 = scalar_lea.vmem %s17_s20, 512  ;;  %p1008_p6 = scmp.lt.s32.totalorder %s17_s20, %s17_s20 }
  0x11   :  { %p1004_p5 = scmp.ne.s32.totalorder %s17_s20, %s1003_s21  ;;  %p1009_p7 = scmp.lt.s32.totalorder %s1003_s21, %s1003_s21 }
  0x13   :  { %p1010_p8 = por %p1009_p7, %p1008_p6 }
  0x15   :  { %p1011_p9 = pnand %p1010_p8, %p1004_p5 }
  0x17   :  { %1014 = shalt.err (!%p1011_p9)
}
  0x18   :  { %s1065_s22 = smov 256   ;;  %s1066_s23 = smov 16  }
  0x19   :  { %22 = dma.hbm_to_vmem [thread:$0]  %s1172_s0, 512, %s17_s20, [#allocation3], %s1065_s22, %s1065_s22, %s1066_s23  }
  0x1a   :  { %s1067_s26 = smov [#allocation7]  }
  0x1b   :  { %s41_s27 = sshll.u32 %s1067_s26, 4  ;;  %s42_s27 = int_to_ptr.vmem [resolvable:$true] %s41_s27 }
  0x1c   :  { %s1023_s1 = scalar_lea.vmem %s42_s27, 128  ;;  %p1028_p11 = scmp.lt.s32.totalorder %s42_s27, %s42_s27 }
  0x1d   :  { %p1024_p10 = scmp.ne.s32.totalorder %s42_s27, %s1023_s1  ;;  %p1029_p12 = scmp.lt.s32.totalorder %s1023_s1, %s1023_s1 }
  0x1f   :  { %p1030_p13 = por %p1029_p12, %p1028_p11 }
  0x21   :  { %p1031_p0 = pnand %p1030_p13, %p1024_p10 }
  0x23   :  { %1034 = shalt.err (!%p1031_p0)
}
  0x24   :  { %44 = dma.hbm_to_vmem [thread:$0]  %s1174_s2, 128, %s42_s27, [#allocation6]  }
  0x25   :  { %1055 = dma.done.wait [#allocation3], 512  }
  0x26   :  { %1056 = vsyncadd [#allocation3], 4294966784 }
  0x27   :  { %1057 = dma.done.wait [#allocation6], 1792  }
  0x28   :  { %1058 = vsyncadd [#allocation6], 4294965504  ;;  %v1068_v0 = vmov 0.0   ;;  %vm1069_vm0 = vmmov 0   ;;  %v901_v1 = vld [vmem:[#allocation5 + $0x18] sm:$0xff]   ;;  %v902_v2 = vld [vmem:[#allocation5 + $0x10] sm:$0xff]  }
  0x29   :  { %829 = vmatprep.subr.bf16.mxu0 %v1068_v0  ;;  %726 = vst [vmem:[#allocation8] sm:$0xff] %v1068_v0  ;;  %727 = vst [vmem:[#allocation8 + $0x8] sm:$0xff] %v1068_v0  ;;  %837 = vmatprep.mubr.msk.bf16.mxu0 %vm1069_vm0, %v1068_v0  ;;  %v903_v3 = vld [vmem:[#allocation5 + $0x8] sm:$0xff]   ;;  %v904_v4 = vld [vmem:[#allocation5] sm:$0xff]   ;;  %vm99_vm1 = vcmask 523264   ;;  %vm182_vm2 = vcmask 261120  }
  0x2a   :  { %728 = vst [vmem:[#allocation8 + $0x10] sm:$0xff] %v1068_v0  ;;  %729 = vst [vmem:[#allocation8 + $0x18] sm:$0xff] %v1068_v0  ;;  %841 = vmatprep.subr.bf16.mxu1 %v1068_v0  ;;  %845 = vmatprep.mubr.msk.bf16.mxu1 %vm1069_vm0, %v1068_v0  ;;  %v55_v5 = vld [vmem:[#allocation2] sm:$0xff]  ;;  %v56_v6 = vld [vmem:[#allocation2 + $0x10] sm:$0xff]  ;;  %vm257_vm3 = vcmask 130048   ;;  %vm329_vm4 = vcmask 1043456  }
  0x2b   :  { %730 = vst [vmem:[#allocation8 + $0x20] sm:$0xff] %v1068_v0  ;;  %731 = vst [vmem:[#allocation8 + $0x28] sm:$0xff] %v1068_v0  ;;  %830 = vmatpush3.bf16.msra.mxu0 %v901_v1  ;;  %v68_v7 = vpack.c.bf16 %v56_v6, %v55_v5  ;;  %v905_v8 = vld [vmem:[#allocation5 + $0x28] sm:$0xff]   ;;  %v906_v9 = vld [vmem:[#allocation5 + $0x20] sm:$0xff]   ;;  %s1070_s0 = smov 8   ;;  %vm325_vm5 = vcmask 64512  }
  0x2c   :  { %732 = vst [vmem:[#allocation8 + $0x30] sm:$0xff] %v1068_v0  ;;  %733 = vst [vmem:[#allocation8 + $0x38] sm:$0xff] %v1068_v0  ;;  %831 = vmatprep.subr.bf16.mxu0 %v1068_v0  ;;  %842 = vmatpush3.bf16.msra.mxu1 %v905_v8  ;;  %v768_v10 = vld [vmem:[#allocation7] ss:$0 sm:$0xff]  ;;  %v907_v28 = vld [vmem:[#allocation5 + $0x40] sm:$0xff]   ;;  %s1071_s2 = smov 120  }
  0x2d   :  { %843 = vmatprep.subr.bf16.mxu1 %v1068_v0  ;;  %v776_v29 = vld [vmem:[#allocation7 + $0x1] ss:$0 sm:$0xff]  ;;  %v58_v50 = vld [vmem:[#allocation2 + $0x18] sm:$0xff]  ;;  %v782_v51 = vld [vmem:[#allocation7 + $0x2] ss:$0 sm:$0xff]  ;;  %s1072_s30 = smov [#allocation8]  }
  0x2e   :  { %v316_v47 = vld [vmem:[#allocation5 + $0x48] sm:$0xf]  ;;  %s755_s4 = sshll.u32 %s1072_s30, 4  ;;  %s756_s4 = int_to_ptr.vmem [resolvable:$true] %s755_s4 }
  0x2f   :  { %832 = vmatpush3.bf16.msra.mxu0 %v902_v2  ;;  %v331_v48 = vsel %vm329_vm4, %v316_v47, 0  ;;  %v57_v49 = vld [vmem:[#allocation2 + $0x8] sm:$0xff]  ;;  %s1035_s5 = scalar_lea.vmem %s756_s4, 1024  ;;  %p1040_p2 = scmp.lt.s32.totalorder %s756_s4, %s756_s4 }
  0x30   :  { %833 = vmatprep.subr.bf16.mxu0 %v1068_v0  ;;  %844 = vmatpush3.bf16.msra.mxu1 %v906_v9  ;;  %v787_v6 = vld [vmem:[#allocation7 + $0x3] ss:$0 sm:$0xff]  ;;  %p1036_p1 = scmp.ne.s32.totalorder %s756_s4, %s1035_s5  ;;  %p1041_p3 = scmp.lt.s32.totalorder %s1035_s5, %s1035_s5 }
  0x31   :  { %849 = vmatprep.subr.bf16.mxu1 %v1068_v0  ;;  %414 = vrot.lane.b32.xlu0 %v57_v49, %s1070_s0 }
  0x32   :  { %p1042_p4 = por %p1041_p3, %p1040_p2 }
  0x33   :  { %834 = vmatpush3.bf16.msra.mxu0 %v903_v3 }
  0x34   :  { %835 = vmatprep.subr.bf16.mxu0 %v1068_v0  ;;  %p1043_p5 = pnand %p1042_p4, %p1036_p1 }
  0x35   :  { %416 = vrot.lane.b32.xlu0 %v58_v50, %s1070_s0 }
  0x37   :  { %836 = vmatpush3.bf16.msra.mxu0 %v904_v4 }
  0x38   :  { %855 = vmatprep.subr.bf16.mxu0 %v1068_v0 }
  0x3a   :  { %838 = vmatmul.mubr.msk.bf16.vlgmr.msra.gmra.mxu0 %vm99_vm1, %v68_v7 }
  0x3b   :  { %857 = vmatprep.mubr.msk.bf16.mxu0 %vm1069_vm0, %v1068_v0  ;;  %856 = vmatpush3.bf16.msra.mxu0 %v331_v48 }
  0x3c   :  { %867 = vmatprep.subr.bf16.mxu0 %v1068_v0 }
  0xfa   :  { %v137_v11 = vpop.f32.mrf.mxu0 }
  0xfb   :  { %v138_v12 = vadd.f32 %v768_v10, %v137_v11 }
  0xfc   :  { %v839_v13 = vpop.f32.mrf.mxu0 }
  0xfd   :  { %v774_v14 = vmul.f32 -1.442695, %v138_v12 }
  0xfe   :  { %v140_v15 = vpop.f32.mrf.mxu0 }
  0xff   :  { %911 = vpow2.f32 %v774_v14  ;;  %v141_v16 = vadd.f32 %v768_v10, %v140_v15 }
 0x100   :  { %v840_v17 = vpop.f32.mrf.mxu0 }
 0x101   :  { %v775_v18 = vmul.f32 -1.442695, %v141_v16 }
 0x103   :  { %913 = vpow2.f32 %v775_v18 }
 0x10c   :  { %v912_v19 = vpop.eup %911 }
 0x10d   :  { %v150_v20 = vadd.f32 1.0, %v912_v19 }
 0x10f   :  { %915 = vrcp.f32 %v150_v20 }
 0x110   :  { %v914_v21 = vpop.eup %913 }
 0x111   :  { %v151_v22 = vadd.f32 1.0, %v914_v21 }
 0x113   :  { %917 = vrcp.f32 %v151_v22 }
 0x11c   :  { %v916_v23 = vpop.eup %915 }
 0x11d   :  { %v156_v25 = vmul.f32 %v916_v23, %v138_v12 }
 0x120   :  { %v918_v24 = vpop.eup %917 }
 0x121   :  { %v157_v26 = vmul.f32 %v918_v24, %v141_v16 }
 0x123   :  { %v163_v27 = vpack.c.bf16 %v157_v26, %v156_v25 }
 0x125   :  { %846 = vmatmul.mubr.msk.bf16.vlgmr.msra.gmra.mxu1 %vm182_vm2, %v163_v27 }
 0x126   :  { %851 = vmatprep.mubr.msk.bf16.mxu1 %vm1069_vm0, %v1068_v0  ;;  %850 = vmatpush3.bf16.msra.mxu1 %v907_v28  ;;  %v432_v28 = vld [vmem:[#allocation5 + $0x50] sm:$0xf] }
 0x127   :  { %861 = vmatprep.subr.bf16.mxu1 %v1068_v0 }
 0x1e5   :  { %v220_v30 = vpop.f32.mrf.mxu1 }
 0x1e6   :  { %v221_v31 = vadd.f32 %v776_v29, %v220_v30 }
 0x1e7   :  { %v847_v32 = vpop.f32.mrf.mxu1 }
 0x1e8   :  { %v780_v33 = vmul.f32 -1.442695, %v221_v31  ;;  %v445_v32 = vsel %vm329_vm4, %v432_v28, 0 }
 0x1e9   :  { %v223_v34 = vpop.f32.mrf.mxu1 }
 0x1ea   :  { %919 = vpow2.f32 %v780_v33  ;;  %v224_v35 = vadd.f32 %v776_v29, %v223_v34 }
 0x1eb   :  { %v848_v36 = vpop.f32.mrf.mxu1 }
 0x1ec   :  { %v781_v37 = vmul.f32 -1.442695, %v224_v35 }
 0x1ee   :  { %921 = vpow2.f32 %v781_v37  ;;  %v415_v37 = vpop.permute.xlu0 %414 }
 0x1f2   :  { %v417_v47 = vpop.permute.xlu0 %416 }
 0x1f7   :  { %v920_v38 = vpop.eup %919 }
 0x1f8   :  { %v233_v39 = vadd.f32 1.0, %v920_v38 }
 0x1fa   :  { %923 = vrcp.f32 %v233_v39 }
 0x1fb   :  { %v922_v40 = vpop.eup %921 }
 0x1fc   :  { %v234_v41 = vadd.f32 1.0, %v922_v40 }
 0x1fe   :  { %925 = vrcp.f32 %v234_v41 }
 0x207   :  { %v924_v42 = vpop.eup %923 }
 0x208   :  { %v239_v44 = vmul.f32 %v924_v42, %v221_v31 }
 0x20b   :  { %v926_v43 = vpop.eup %925 }
 0x20c   :  { %v240_v45 = vmul.f32 %v926_v43, %v224_v35 }
 0x20e   :  { %v244_v46 = vpack.c.bf16 %v240_v45, %v239_v44 }
 0x210   :  { %852 = vmatmul.mubr.msk.bf16.vlgmr.msra.gmra.mxu1 %vm257_vm3, %v244_v46 }
 0x211   :  { %863 = vmatprep.mubr.msk.bf16.mxu1 %vm1069_vm0, %v1068_v0  ;;  %862 = vmatpush3.bf16.msra.mxu1 %v445_v32 }
 0x212   :  { %873 = vmatprep.subr.bf16.mxu1 %v1068_v0 }
 0x2d0   :  { %v295_v52 = vpop.f32.mrf.mxu1 }
 0x2d1   :  { %v296_v53 = vadd.f32 %v782_v51, %v295_v52 }
 0x2d2   :  { %v853_v54 = vpop.f32.mrf.mxu1 }
 0x2d3   :  { %v785_v55 = vmul.f32 -1.442695, %v296_v53 }
 0x2d4   :  { %v298_v56 = vpop.f32.mrf.mxu1 }
 0x2d5   :  { %927 = vpow2.f32 %v785_v55  ;;  %v299_v57 = vadd.f32 %v782_v51, %v298_v56 }
 0x2d6   :  { %v854_v58 = vpop.f32.mrf.mxu1 }
 0x2d7   :  { %v786_v59 = vmul.f32 -1.442695, %v299_v57  ;;  %v502_v58 = vld [vmem:[#allocation5 + $0x58] sm:$0xf] }
 0x2d9   :  { %929 = vpow2.f32 %v786_v59  ;;  %v515_v59 = vsel %vm329_vm4, %v502_v58, 0 }
 0x2e2   :  { %v928_v60 = vpop.eup %927 }
 0x2e3   :  { %v308_v61 = vadd.f32 1.0, %v928_v60  ;;  %v789_v60 = vld [vmem:[#allocation7 + $0x4] ss:$0 sm:$0xff] }
 0x2e5   :  { %931 = vrcp.f32 %v308_v61 }
 0x2e6   :  { %v930_v62 = vpop.eup %929 }
 0x2e7   :  { %v309_v63 = vadd.f32 1.0, %v930_v62 }
 0x2e9   :  { %933 = vrcp.f32 %v309_v63 }
 0x2f2   :  { %v932_v1 = vpop.eup %931 }
 0x2f3   :  { %v314_v3 = vmul.f32 %v932_v1, %v296_v53 }
 0x2f6   :  { %v934_v2 = vpop.eup %933 }
 0x2f7   :  { %v315_v4 = vmul.f32 %v934_v2, %v299_v57 }
 0x2f9   :  { %v318_v5 = vpack.c.bf16 %v315_v4, %v314_v3 }
 0x2fb   :  { %858 = vmatmul.mubr.msk.bf16.vlgmr.msra.gmra.mxu0 %vm325_vm5, %v318_v5 }
 0x2fc   :  { %869 = vmatprep.mubr.msk.bf16.mxu0 %vm1069_vm0, %v1068_v0  ;;  %868 = vmatpush3.bf16.msra.mxu0 %v515_v59 }
 0x2fd   :  { %879 = vmatprep.subr.bf16.mxu0 %v1068_v0 }
 0x3bb   :  { %v367_v7 = vpop.f32.mrf.mxu0 }
 0x3bc   :  { %v1139_v8 = vadd.f32 %v787_v6, %v367_v7 }
 0x3bd   :  { %v859_v9 = vpop.f32.mrf.mxu0 }
 0x3be   :  { %v380_v10 = vand.u32 2147483647, %v1139_v8  ;;  %736 = vst.msk [vmem:[#allocation8 + $0x8] sm:$0xff] %vm325_vm5, %v1139_v8  ;;  %v374_v33 = vmax.f32 %v1139_v8, 0.0  ;;  %vm376_vm7 = vcmp.ne.f32.partialorder %v1139_v8, %v1139_v8 }
 0x3bf   :  { %v370_v11 = vpop.f32.mrf.mxu0 }
 0x3c0   :  { %v382_v12 = vsub.f32 0.0, %v380_v10  ;;  %v371_v13 = vadd.f32 %v787_v6, %v370_v11 }
 0x3c1   :  { %v860_v14 = vpop.f32.mrf.mxu0 }
 0x3c2   :  { %v384_v15 = vmul.f32 1.442695, %v382_v12  ;;  %v381_v16 = vand.u32 2147483647, %v371_v13  ;;  %737 = vst.msk [vmem:[#allocation8 + $0x28] sm:$0xff] %vm325_vm5, %v371_v13  ;;  %v375_v42 = vmax.f32 %v371_v13, 0.0  ;;  %vm377_vm9 = vcmp.ne.f32.partialorder %v371_v13, %v371_v13 }
 0x3c4   :  { %935 = vpow2.f32 %v384_v15  ;;  %v383_v17 = vsub.f32 0.0, %v381_v16  ;;  %v908_v15 = vld [vmem:[#allocation5 + $0x60] sm:$0xff]   ;;  %v793_v16 = vld [vmem:[#allocation7 + $0x5] ss:$0 sm:$0xff] }
 0x3c6   :  { %v386_v18 = vmul.f32 1.442695, %v383_v17 }
 0x3c8   :  { %937 = vpow2.f32 %v386_v18 }
 0x3d1   :  { %v936_v19 = vpop.eup %935 }
 0x3d2   :  { %v388_v20 = vadd.f32 1.0, %v936_v19  ;;  %v391_v23 = vmul.f32 -0.5, %v936_v19  ;;  %v394_v26 = vand.u32 2147483647, %v936_v19 }
 0x3d4   :  { %939 = vlog2.f32 %v388_v20  ;;  %v392_v24 = vadd.f32 1.0, %v391_v23  ;;  %vm395_vm6 = vcmp.lt.f32.partialorder %v394_v26, 0.0004427343 }
 0x3d5   :  { %v938_v21 = vpop.eup %937 }
 0x3d6   :  { %v397_v22 = vadd.f32 1.0, %v938_v21  ;;  %v400_v25 = vmul.f32 -0.5, %v938_v21  ;;  %v393_v30 = vmul.f32 %v936_v19, %v392_v24  ;;  %v403_v34 = vand.u32 2147483647, %v938_v21 }
 0x3d8   :  { %941 = vlog2.f32 %v397_v22  ;;  %v401_v31 = vadd.f32 1.0, %v400_v25  ;;  %vm404_vm8 = vcmp.lt.f32.partialorder %v403_v34, 0.0004427343  ;;  %v909_v34 = vld [vmem:[#allocation5 + $0x38] sm:$0xff]  }
 0x3da   :  { %v402_v40 = vmul.f32 %v938_v21, %v401_v31 }
 0x3e1   :  { %v940_v27 = vpop.eup %939 }
 0x3e2   :  { %v390_v29 = vmul.f32 0.6931472, %v940_v27 }
 0x3e4   :  { %v396_v35 = vsel %vm395_vm6, %v393_v30, %v390_v29 }
 0x3e5   :  { %v942_v36 = vpop.eup %941  ;;  %v406_v38 = vadd.f32 %v396_v35, %v374_v33  ;;  %v910_v35 = vld [vmem:[#allocation5 + $0x30] sm:$0xff]  }
 0x3e6   :  { %v399_v39 = vmul.f32 0.6931472, %v942_v36  ;;  %v797_v36 = vld [vmem:[#allocation7 + $0x6] ss:$0 sm:$0xff] }
 0x3e7   :  { %v408_v41 = vsel %vm376_vm7, %v1139_v8, %v406_v38 }
 0x3e8   :  { %v410_v43 = vadd.f32 1e-08, %v408_v41  ;;  %v405_v44 = vsel %vm404_vm8, %v402_v40, %v399_v39 }
 0x3e9   :  { %v407_v45 = vadd.f32 %v405_v44, %v375_v42 }
 0x3ea   :  { %v420_v46 = vmul.f32 %v415_v37, %v410_v43  ;;  %740 = vrot.lane.b32.xlu0 %v410_v43, %s1071_s2 }
 0x3eb   :  { %v409_v48 = vsel %vm377_vm9, %v371_v13, %v407_v45 }
 0x3ec   :  { %424 = vrot.lane.b32.xlu1 %v420_v46, %s1071_s2  ;;  %v411_v49 = vadd.f32 1e-08, %v409_v48 }
 0x3ee   :  { %v421_v50 = vmul.f32 %v417_v47, %v411_v49 }
 0x3f0   :  { %426 = vrot.lane.b32.xlu1 %v421_v50, %s1071_s2 }
 0x3f4   :  { %742 = vrot.lane.b32.xlu1 %v411_v49, %s1071_s2 }
 0x45c   :  { %v741_v51 = vpop.permute.xlu0 %740 }
 0x45d   :  { %746 = vst.msk [vmem:[#allocation8 + $0x10] sm:$0xff] %vm325_vm5, %v741_v51 }
 0x45e   :  { %v425_v52 = vpop.permute.xlu1 %424 }
 0x45f   :  { %v430_v53 = vadd.f32 %v425_v52, %v1139_v8 }
 0x461   :  { %748 = vst.msk [vmem:[#allocation8 + $0x18] sm:$0xff] %vm325_vm5, %v430_v53 }
 0x462   :  { %v427_v54 = vpop.permute.xlu1 %426 }
 0x463   :  { %v431_v55 = vadd.f32 %v427_v54, %v371_v13 }
 0x465   :  { %v434_v56 = vpack.c.bf16 %v431_v55, %v430_v53  ;;  %749 = vst.msk [vmem:[#allocation8 + $0x38] sm:$0xff] %vm325_vm5, %v431_v55  ;;  %v802_v53 = vld [vmem:[#allocation7 + $0x7] ss:$0 sm:$0xff] }
 0x466   :  { %v743_v57 = vpop.permute.xlu1 %742 }
 0x467   :  { %747 = vst.msk [vmem:[#allocation8 + $0x30] sm:$0xff] %vm325_vm5, %v743_v57  ;;  %864 = vmatmul.mubr.msk.bf16.vlgmr.msra.gmra.mxu1 %vm325_vm5, %v434_v56 }
 0x468   :  { %875 = vmatprep.mubr.msk.bf16.mxu1 %vm1069_vm0, %v1068_v0  ;;  %874 = vmatpush3.bf16.msra.mxu1 %v908_v15 }
 0x527   :  { %v481_v61 = vpop.f32.mrf.mxu1 }
 0x528   :  { %v482_v62 = vadd.f32 %v789_v60, %v481_v61 }
 0x529   :  { %v865_v63 = vpop.f32.mrf.mxu1 }
 0x52a   :  { %v791_v1 = vmul.f32 -1.442695, %v482_v62 }
 0x52b   :  { %v484_v2 = vpop.f32.mrf.mxu1 }
 0x52c   :  { %943 = vpow2.f32 %v791_v1  ;;  %v485_v3 = vadd.f32 %v789_v60, %v484_v2 }
 0x52d   :  { %v866_v4 = vpop.f32.mrf.mxu1 }
 0x52e   :  { %v792_v5 = vmul.f32 -1.442695, %v485_v3 }
 0x530   :  { %945 = vpow2.f32 %v792_v5 }
 0x539   :  { %v944_v6 = vpop.eup %943 }
 0x53a   :  { %v494_v7 = vadd.f32 1.0, %v944_v6 }
 0x53c   :  { %947 = vrcp.f32 %v494_v7 }
 0x53d   :  { %v946_v8 = vpop.eup %945 }
 0x53e   :  { %v495_v9 = vadd.f32 1.0, %v946_v8 }
 0x540   :  { %949 = vrcp.f32 %v495_v9 }
 0x549   :  { %v948_v10 = vpop.eup %947 }
 0x54a   :  { %v500_v12 = vmul.f32 %v948_v10, %v482_v62 }
 0x54d   :  { %v950_v11 = vpop.eup %949 }
 0x54e   :  { %v501_v13 = vmul.f32 %v950_v11, %v485_v3 }
 0x550   :  { %v504_v14 = vpack.c.bf16 %v501_v13, %v500_v12 }
 0x552   :  { %870 = vmatmul.mubr.msk.bf16.vlgmr.msra.gmra.mxu0 %vm325_vm5, %v504_v14 }
 0x553   :  { %883 = vmatprep.mubr.msk.bf16.mxu0 %vm1069_vm0, %v1068_v0  ;;  %880 = vmatpush3.bf16.msra.mxu0 %v909_v34 }
 0x554   :  { %881 = vmatprep.subr.bf16.mxu0 %v1068_v0 }
 0x557   :  { %882 = vmatpush3.bf16.msra.mxu0 %v910_v35 }
 0x612   :  { %v551_v17 = vpop.f32.mrf.mxu0 }
 0x613   :  { %v552_v18 = vadd.f32 %v793_v16, %v551_v17 }
 0x614   :  { %v871_v19 = vpop.f32.mrf.mxu0 }
 0x615   :  { %v795_v20 = vmul.f32 -1.442695, %v552_v18 }
 0x616   :  { %v554_v21 = vpop.f32.mrf.mxu0 }
 0x617   :  { %951 = vpow2.f32 %v795_v20  ;;  %v555_v22 = vadd.f32 %v793_v16, %v554_v21 }
 0x618   :  { %v872_v23 = vpop.f32.mrf.mxu0 }
 0x619   :  { %v796_v24 = vmul.f32 -1.442695, %v555_v22 }
 0x61b   :  { %953 = vpow2.f32 %v796_v24 }
 0x624   :  { %v952_v25 = vpop.eup %951 }
 0x625   :  { %v564_v26 = vadd.f32 1.0, %v952_v25 }
 0x627   :  { %955 = vrcp.f32 %v564_v26 }
 0x628   :  { %v954_v27 = vpop.eup %953 }
 0x629   :  { %v565_v28 = vadd.f32 1.0, %v954_v27 }
 0x62b   :  { %957 = vrcp.f32 %v565_v28 }
 0x634   :  { %v956_v29 = vpop.eup %955 }
 0x635   :  { %v570_v31 = vmul.f32 %v956_v29, %v552_v18 }
 0x638   :  { %v958_v30 = vpop.eup %957 }
 0x639   :  { %v571_v32 = vmul.f32 %v958_v30, %v555_v22 }
 0x63b   :  { %v575_v33 = vpack.c.bf16 %v571_v32, %v570_v31 }
 0x63d   :  { %876 = vmatmul.mubr.msk.bf16.vlgmr.msra.gmra.mxu1 %vm257_vm3, %v575_v33 }
 0x6fd   :  { %v625_v37 = vpop.f32.mrf.mxu1 }
 0x6fe   :  { %v626_v38 = vadd.f32 %v797_v36, %v625_v37 }
 0x6ff   :  { %v877_v39 = vpop.f32.mrf.mxu1 }
 0x700   :  { %v800_v40 = vmul.f32 -1.442695, %v626_v38 }
 0x701   :  { %v628_v41 = vpop.f32.mrf.mxu1 }
 0x702   :  { %959 = vpow2.f32 %v800_v40  ;;  %v629_v42 = vadd.f32 %v797_v36, %v628_v41 }
 0x703   :  { %v878_v43 = vpop.f32.mrf.mxu1 }
 0x704   :  { %v801_v44 = vmul.f32 -1.442695, %v629_v42 }
 0x706   :  { %961 = vpow2.f32 %v801_v44 }
 0x70f   :  { %v960_v45 = vpop.eup %959 }
 0x710   :  { %v638_v46 = vadd.f32 1.0, %v960_v45 }
 0x712   :  { %963 = vrcp.f32 %v638_v46 }
 0x713   :  { %v962_v47 = vpop.eup %961 }
 0x714   :  { %v639_v48 = vadd.f32 1.0, %v962_v47 }
 0x716   :  { %965 = vrcp.f32 %v639_v48 }
 0x71f   :  { %v964_v0 = vpop.eup %963 }
 0x720   :  { %v644_v50 = vmul.f32 %v964_v0, %v626_v38 }
 0x723   :  { %v966_v49 = vpop.eup %965 }
 0x724   :  { %v645_v51 = vmul.f32 %v966_v49, %v629_v42 }
 0x726   :  { %v651_v52 = vpack.c.bf16 %v645_v51, %v644_v50 }
 0x728   :  { %884 = vmatmul.mubr.msk.bf16.vlgmr.msra.gmra.mxu0 %vm182_vm2, %v651_v52 }
 0x7e8   :  { %v707_v54 = vpop.f32.mrf.mxu0 }
 0x7e9   :  { %v708_v55 = vadd.f32 %v802_v53, %v707_v54 }
 0x7ea   :  { %v885_v56 = vpop.f32.mrf.mxu0 }
 0x7eb   :  { %v806_v57 = vmul.f32 -1.442695, %v708_v55 }
 0x7ec   :  { %v710_v58 = vpop.f32.mrf.mxu0 }
 0x7ed   :  { %967 = vpow2.f32 %v806_v57  ;;  %v711_v59 = vadd.f32 %v802_v53, %v710_v58 }
 0x7ee   :  { %v886_v60 = vpop.f32.mrf.mxu0 }
 0x7ef   :  { %v807_v61 = vmul.f32 -1.442695, %v711_v59 }
 0x7f1   :  { %969 = vpow2.f32 %v807_v61 }
 0x7fa   :  { %v968_v62 = vpop.eup %967 }
 0x7fb   :  { %v720_v63 = vadd.f32 1.0, %v968_v62 }
 0x7fd   :  { %971 = vrcp.f32 %v720_v63 }
 0x7fe   :  { %v970_v1 = vpop.eup %969 }
 0x7ff   :  { %v721_v2 = vadd.f32 1.0, %v970_v1 }
 0x801   :  { %973 = vrcp.f32 %v721_v2 }
 0x80a   :  { %v972_v3 = vpop.eup %971 }
 0x80b   :  { %734 = vst.msk [vmem:[#allocation8] sm:$0xff] %vm99_vm1, %v972_v3 }
 0x80e   :  { %v974_v4 = vpop.eup %973 }
 0x80f   :  { %735 = vst.msk [vmem:[#allocation8 + $0x20] sm:$0xff] %vm99_vm1, %v974_v4 }
 0x810   :  { %1046 = shalt.err (!%p1043_p5)
}
 0x811   :  { %s1073_s6 = smov 512   ;;  %s1074_s7 = smov 32  }
 0x812   :  { %761 = dma.vmem_to_hbm [thread:$0]  %s756_s4, 1024, %s1175_s3, [#allocation4], %s1073_s6, %s1073_s6, %s1074_s7  }
 0x813   :  { %1059 = dma.done.wait [#allocation4], 1024  }
 0x814   :  { %1060 = vsyncadd [#allocation4], 4294966272 }
 0x815   :  { %765 = vsyncpa [#allocation3], 1 }
 0x816   :  { %766 = vsyncpa [#allocation6], 1 }
 0x817   :  { %767 = vsyncpa [#allocation4], 1 }

// kernel: tpu_custom_call.1
= control target key start
LH: loop header
LB: loop body
LE: loop exit
PB: predicated region body
PF: predicated region fallthrough
CT: control target
= control target key end

     0   :  { %8 = vsyncpa [#allocation3], 0  ;;  %s1172_s0 = inlined_call_operand.hbm [shape: f32[16,256], index: 0, kind: input, shape index: {}]   ;;  %s1173_s1 = inlined_call_operand.hbm [shape: bf16[208,128], index: 1, kind: input, shape index: {}]   ;;  %s1174_s2 = inlined_call_operand.hbm [shape: f32[1,1024], index: 2, kind: input, shape index: {}]   ;;  %s1175_s3 = inlined_call_operand.hbm [shape: f32[16,512], index: 3, kind: output, shape index: {}]  }
   0x1   :  { %9 = vsyncpa [#allocation6], 0 }
   0x2   :  { %10 = vsyncpa [#allocation4], 0  ;;  %s1061_s12 = smov [#allocation5]  }
   0x3   :  { %s28_s13 = sshll.u32 %s1061_s12, 4  ;;  %s29_s13 = int_to_ptr.vmem [resolvable:$true] %s28_s13 }
   0x4   :  { %s983_s14 = scalar_lea.vmem %s29_s13, 1664  ;;  %p988_p1 = scmp.lt.s32.totalorder %s29_s13, %s29_s13 }
   0x5   :  { %p984_p0 = scmp.ne.s32.totalorder %s29_s13, %s983_s14  ;;  %p989_p2 = scmp.lt.s32.totalorder %s983_s14, %s983_s14 }
   0x7   :  { %p990_p3 = por %p989_p2, %p988_p1 }
   0x9   :  { %p991_p4 = pnand %p990_p3, %p984_p0 }
   0xb   :  { %994 = shalt.err (!%p991_p4)
}
   0xc   :  { %s1062_s15 = smov 64   ;;  %s1063_s16 = smov 4  }
   0xd   :  { %34 = dma.hbm_to_vmem [thread:$0]  %s1173_s1, 1664, %s29_s13, [#allocation6], %s1062_s15, %s1062_s15, %s1063_s16  }
   0xe   :  { %s1064_s19 = smov [#allocation2]  }
   0xf   :  { %s16_s20 = sshll.u32 %s1064_s19, 4  ;;  %s17_s20 = int_to_ptr.vmem [resolvable:$true] %s16_s20 }
  0x10   :  { %s1003_s21 = scalar_lea.vmem %s17_s20, 512  ;;  %p1008_p6 = scmp.lt.s32.totalorder %s17_s20, %s17_s20 }
  0x11   :  { %p1004_p5 = scmp.ne.s32.totalorder %s17_s20, %s1003_s21  ;;  %p1009_p7 = scmp.lt.s32.totalorder %s1003_s21, %s1003_s21 }
  0x13   :  { %p1010_p8 = por %p1009_p7, %p1008_p6 }
  0x15   :  { %p1011_p9 = pnand %p1010_p8, %p1004_p5 }
  0x17   :  { %1014 = shalt.err (!%p1011_p9)
}
  0x18   :  { %s1065_s22 = smov 256   ;;  %s1066_s23 = smov 16  }
  0x19   :  { %22 = dma.hbm_to_vmem [thread:$0]  %s1172_s0, 512, %s17_s20, [#allocation3], %s1065_s22, %s1065_s22, %s1066_s23  }
  0x1a   :  { %s1067_s26 = smov [#allocation7]  }
  0x1b   :  { %s41_s27 = sshll.u32 %s1067_s26, 4  ;;  %s42_s27 = int_to_ptr.vmem [resolvable:$true] %s41_s27 }
  0x1c   :  { %s1023_s1 = scalar_lea.vmem %s42_s27, 128  ;;  %p1028_p11 = scmp.lt.s32.totalorder %s42_s27, %s42_s27 }
  0x1d   :  { %p1024_p10 = scmp.ne.s32.totalorder %s42_s27, %s1023_s1  ;;  %p1029_p12 = scmp.lt.s32.totalorder %s1023_s1, %s1023_s1 }
  0x1f   :  { %p1030_p13 = por %p1029_p12, %p1028_p11 }
  0x21   :  { %p1031_p0 = pnand %p1030_p13, %p1024_p10 }
  0x23   :  { %1034 = shalt.err (!%p1031_p0)
}
  0x24   :  { %44 = dma.hbm_to_vmem [thread:$0]  %s1174_s2, 128, %s42_s27, [#allocation6]  }
  0x25   :  { %1055 = dma.done.wait [#allocation3], 512  }
  0x26   :  { %1056 = vsyncadd [#allocation3], 4294966784 }
  0x27   :  { %1057 = dma.done.wait [#allocation6], 1792  }
  0x28   :  { %1058 = vsyncadd [#allocation6], 4294965504  ;;  %v1068_v0 = vmov 0.0   ;;  %vm1069_vm0 = vmmov 0   ;;  %v901_v1 = vld [vmem:[#allocation5 + $0x18] sm:$0xff]   ;;  %v902_v2 = vld [vmem:[#allocation5 + $0x10] sm:$0xff]  }
  0x29   :  { %829 = vmatprep.subr.bf16.mxu0 %v1068_v0  ;;  %726 = vst [vmem:[#allocation8] sm:$0xff] %v1068_v0  ;;  %727 = vst [vmem:[#allocation8 + $0x8] sm:$0xff] %v1068_v0  ;;  %837 = vmatprep.mubr.msk.bf16.mxu0 %vm1069_vm0, %v1068_v0  ;;  %v903_v3 = vld [vmem:[#allocation5 + $0x8] sm:$0xff]   ;;  %v904_v4 = vld [vmem:[#allocation5] sm:$0xff]   ;;  %vm99_vm1 = vcmask 523264   ;;  %vm182_vm2 = vcmask 261120  }
  0x2a   :  { %728 = vst [vmem:[#allocation8 + $0x10] sm:$0xff] %v1068_v0  ;;  %729 = vst [vmem:[#allocation8 + $0x18] sm:$0xff] %v1068_v0  ;;  %841 = vmatprep.subr.bf16.mxu1 %v1068_v0  ;;  %845 = vmatprep.mubr.msk.bf16.mxu1 %vm1069_vm0, %v1068_v0  ;;  %v55_v5 = vld [vmem:[#allocation2] sm:$0xff]  ;;  %v56_v6 = vld [vmem:[#allocation2 + $0x10] sm:$0xff]  ;;  %vm257_vm3 = vcmask 130048   ;;  %vm329_vm4 = vcmask 1043456  }
  0x2b   :  { %730 = vst [vmem:[#allocation8 + $0x20] sm:$0xff] %v1068_v0  ;;  %731 = vst [vmem:[#allocation8 + $0x28] sm:$0xff] %v1068_v0  ;;  %830 = vmatpush3.bf16.msra.mxu0 %v901_v1  ;;  %v68_v7 = vpack.c.bf16 %v56_v6, %v55_v5  ;;  %v905_v8 = vld [vmem:[#allocation5 + $0x28] sm:$0xff]   ;;  %v906_v9 = vld [vmem:[#allocation5 + $0x20] sm:$0xff]   ;;  %s1070_s0 = smov 8   ;;  %vm325_vm5 = vcmask 64512  }
  0x2c   :  { %732 = vst [vmem:[#allocation8 + $0x30] sm:$0xff] %v1068_v0  ;;  %733 = vst [vmem:[#allocation8 + $0x38] sm:$0xff] %v1068_v0  ;;  %831 = vmatprep.subr.bf16.mxu0 %v1068_v0  ;;  %842 = vmatpush3.bf16.msra.mxu1 %v905_v8  ;;  %v768_v10 = vld [vmem:[#allocation7] ss:$0 sm:$0xff]  ;;  %v907_v28 = vld [vmem:[#allocation5 + $0x40] sm:$0xff]   ;;  %s1071_s2 = smov 120  }
  0x2d   :  { %843 = vmatprep.subr.bf16.mxu1 %v1068_v0  ;;  %v776_v29 = vld [vmem:[#allocation7 + $0x1] ss:$0 sm:$0xff]  ;;  %v58_v50 = vld [vmem:[#allocation2 + $0x18] sm:$0xff]  ;;  %v782_v51 = vld [vmem:[#allocation7 + $0x2] ss:$0 sm:$0xff]  ;;  %s1072_s30 = smov [#allocation8]  }
  0x2e   :  { %v316_v47 = vld [vmem:[#allocation5 + $0x48] sm:$0xf]  ;;  %s755_s4 = sshll.u32 %s1072_s30, 4  ;;  %s756_s4 = int_to_ptr.vmem [resolvable:$true] %s755_s4 }
  0x2f   :  { %832 = vmatpush3.bf16.msra.mxu0 %v902_v2  ;;  %v331_v48 = vsel %vm329_vm4, %v316_v47, 0  ;;  %v57_v49 = vld [vmem:[#allocation2 + $0x8] sm:$0xff]  ;;  %s1035_s5 = scalar_lea.vmem %s756_s4, 1024  ;;  %p1040_p2 = scmp.lt.s32.totalorder %s756_s4, %s756_s4 }
  0x30   :  { %833 = vmatprep.subr.bf16.mxu0 %v1068_v0  ;;  %844 = vmatpush3.bf16.msra.mxu1 %v906_v9  ;;  %v787_v6 = vld [vmem:[#allocation7 + $0x3] ss:$0 sm:$0xff]  ;;  %p1036_p1 = scmp.ne.s32.totalorder %s756_s4, %s1035_s5  ;;  %p1041_p3 = scmp.lt.s32.totalorder %s1035_s5, %s1035_s5 }
  0x31   :  { %849 = vmatprep.subr.bf16.mxu1 %v1068_v0  ;;  %414 = vrot.lane.b32.xlu0 %v57_v49, %s1070_s0 }
  0x32   :  { %p1042_p4 = por %p1041_p3, %p1040_p2 }
  0x33   :  { %834 = vmatpush3.bf16.msra.mxu0 %v903_v3 }
  0x34   :  { %835 = vmatprep.subr.bf16.mxu0 %v1068_v0  ;;  %p1043_p5 = pnand %p1042_p4, %p1036_p1 }
  0x35   :  { %416 = vrot.lane.b32.xlu0 %v58_v50, %s1070_s0 }
  0x37   :  { %836 = vmatpush3.bf16.msra.mxu0 %v904_v4 }
  0x38   :  { %855 = vmatprep.subr.bf16.mxu0 %v1068_v0 }
  0x3a   :  { %838 = vmatmul.mubr.msk.bf16.vlgmr.msra.gmra.mxu0 %vm99_vm1, %v68_v7 }
  0x3b   :  { %857 = vmatprep.mubr.msk.bf16.mxu0 %vm1069_vm0, %v1068_v0  ;;  %856 = vmatpush3.bf16.msra.mxu0 %v331_v48 }
  0x3c   :  { %867 = vmatprep.subr.bf16.mxu0 %v1068_v0 }
  0xfa   :  { %v137_v11 = vpop.f32.mrf.mxu0 }
  0xfb   :  { %v138_v12 = vadd.f32 %v768_v10, %v137_v11 }
  0xfc   :  { %v839_v13 = vpop.f32.mrf.mxu0 }
  0xfd   :  { %v774_v14 = vmul.f32 -1.442695, %v138_v12 }
  0xfe   :  { %v140_v15 = vpop.f32.mrf.mxu0 }
  0xff   :  { %911 = vpow2.f32 %v774_v14  ;;  %v141_v16 = vadd.f32 %v768_v10, %v140_v15 }
 0x100   :  { %v840_v17 = vpop.f32.mrf.mxu0 }
 0x101   :  { %v775_v18 = vmul.f32 -1.442695, %v141_v16 }
 0x103   :  { %913 = vpow2.f32 %v775_v18 }
 0x10c   :  { %v912_v19 = vpop.eup %911 }
 0x10d   :  { %v150_v20 = vadd.f32 1.0, %v912_v19 }
 0x10f   :  { %915 = vrcp.f32 %v150_v20 }
 0x110   :  { %v914_v21 = vpop.eup %913 }
 0x111   :  { %v151_v22 = vadd.f32 1.0, %v914_v21 }
 0x113   :  { %917 = vrcp.f32 %v151_v22 }
 0x11c   :  { %v916_v23 = vpop.eup %915 }
 0x11d   :  { %v156_v25 = vmul.f32 %v916_v23, %v138_v12 }
 0x120   :  { %v918_v24 = vpop.eup %917 }
 0x121   :  { %v157_v26 = vmul.f32 %v918_v24, %v141_v16 }
 0x123   :  { %v163_v27 = vpack.c.bf16 %v157_v26, %v156_v25 }
 0x125   :  { %846 = vmatmul.mubr.msk.bf16.vlgmr.msra.gmra.mxu1 %vm182_vm2, %v163_v27 }
 0x126   :  { %851 = vmatprep.mubr.msk.bf16.mxu1 %vm1069_vm0, %v1068_v0  ;;  %850 = vmatpush3.bf16.msra.mxu1 %v907_v28  ;;  %v432_v28 = vld [vmem:[#allocation5 + $0x50] sm:$0xf] }
 0x127   :  { %861 = vmatprep.subr.bf16.mxu1 %v1068_v0 }
 0x1e5   :  { %v220_v30 = vpop.f32.mrf.mxu1 }
 0x1e6   :  { %v221_v31 = vadd.f32 %v776_v29, %v220_v30 }
 0x1e7   :  { %v847_v32 = vpop.f32.mrf.mxu1 }
 0x1e8   :  { %v780_v33 = vmul.f32 -1.442695, %v221_v31  ;;  %v445_v32 = vsel %vm329_vm4, %v432_v28, 0 }
 0x1e9   :  { %v223_v34 = vpop.f32.mrf.mxu1 }
 0x1ea   :  { %919 = vpow2.f32 %v780_v33  ;;  %v224_v35 = vadd.f32 %v776_v29, %v223_v34 }
 0x1eb   :  { %v848_v36 = vpop.f32.mrf.mxu1 }
 0x1ec   :  { %v781_v37 = vmul.f32 -1.442695, %v224_v35 }
 0x1ee   :  { %921 = vpow2.f32 %v781_v37  ;;  %v415_v37 = vpop.permute.xlu0 %414 }
 0x1f2   :  { %v417_v47 = vpop.permute.xlu0 %416 }
 0x1f7   :  { %v920_v38 = vpop.eup %919 }
 0x1f8   :  { %v233_v39 = vadd.f32 1.0, %v920_v38 }
 0x1fa   :  { %923 = vrcp.f32 %v233_v39 }
 0x1fb   :  { %v922_v40 = vpop.eup %921 }
 0x1fc   :  { %v234_v41 = vadd.f32 1.0, %v922_v40 }
 0x1fe   :  { %925 = vrcp.f32 %v234_v41 }
 0x207   :  { %v924_v42 = vpop.eup %923 }
 0x208   :  { %v239_v44 = vmul.f32 %v924_v42, %v221_v31 }
 0x20b   :  { %v926_v43 = vpop.eup %925 }
 0x20c   :  { %v240_v45 = vmul.f32 %v926_v43, %v224_v35 }
 0x20e   :  { %v244_v46 = vpack.c.bf16 %v240_v45, %v239_v44 }
 0x210   :  { %852 = vmatmul.mubr.msk.bf16.vlgmr.msra.gmra.mxu1 %vm257_vm3, %v244_v46 }
 0x211   :  { %863 = vmatprep.mubr.msk.bf16.mxu1 %vm1069_vm0, %v1068_v0  ;;  %862 = vmatpush3.bf16.msra.mxu1 %v445_v32 }
 0x212   :  { %873 = vmatprep.subr.bf16.mxu1 %v1068_v0 }
 0x2d0   :  { %v295_v52 = vpop.f32.mrf.mxu1 }
 0x2d1   :  { %v296_v53 = vadd.f32 %v782_v51, %v295_v52 }
 0x2d2   :  { %v853_v54 = vpop.f32.mrf.mxu1 }
 0x2d3   :  { %v785_v55 = vmul.f32 -1.442695, %v296_v53 }
 0x2d4   :  { %v298_v56 = vpop.f32.mrf.mxu1 }
 0x2d5   :  { %927 = vpow2.f32 %v785_v55  ;;  %v299_v57 = vadd.f32 %v782_v51, %v298_v56 }
 0x2d6   :  { %v854_v58 = vpop.f32.mrf.mxu1 }
 0x2d7   :  { %v786_v59 = vmul.f32 -1.442695, %v299_v57  ;;  %v502_v58 = vld [vmem:[#allocation5 + $0x58] sm:$0xf] }
 0x2d9   :  { %929 = vpow2.f32 %v786_v59  ;;  %v515_v59 = vsel %vm329_vm4, %v502_v58, 0 }
 0x2e2   :  { %v928_v60 = vpop.eup %927 }
 0x2e3   :  { %v308_v61 = vadd.f32 1.0, %v928_v60  ;;  %v789_v60 = vld [vmem:[#allocation7 + $0x4] ss:$0 sm:$0xff] }
 0x2e5   :  { %931 = vrcp.f32 %v308_v61 }
 0x2e6   :  { %v930_v62 = vpop.eup %929 }
 0x2e7   :  { %v309_v63 = vadd.f32 1.0, %v930_v62 }
 0x2e9   :  { %933 = vrcp.f32 %v309_v63 }
 0x2f2   :  { %v932_v1 = vpop.eup %931 }
 0x2f3   :  { %v314_v3 = vmul.f32 %v932_v1, %v296_v53 }
 0x2f6   :  { %v934_v2 = vpop.eup %933 }
 0x2f7   :  { %v315_v4 = vmul.f32 %v934_v2, %v299_v57 }
 0x2f9   :  { %v318_v5 = vpack.c.bf16 %v315_v4, %v314_v3 }
 0x2fb   :  { %858 = vmatmul.mubr.msk.bf16.vlgmr.msra.gmra.mxu0 %vm325_vm5, %v318_v5 }
 0x2fc   :  { %869 = vmatprep.mubr.msk.bf16.mxu0 %vm1069_vm0, %v1068_v0  ;;  %868 = vmatpush3.bf16.msra.mxu0 %v515_v59 }
 0x2fd   :  { %879 = vmatprep.subr.bf16.mxu0 %v1068_v0 }
 0x3bb   :  { %v367_v7 = vpop.f32.mrf.mxu0 }
 0x3bc   :  { %v1139_v8 = vadd.f32 %v787_v6, %v367_v7 }
 0x3bd   :  { %v859_v9 = vpop.f32.mrf.mxu0 }
 0x3be   :  { %v380_v10 = vand.u32 2147483647, %v1139_v8  ;;  %736 = vst.msk [vmem:[#allocation8 + $0x8] sm:$0xff] %vm325_vm5, %v1139_v8  ;;  %v374_v33 = vmax.f32 %v1139_v8, 0.0  ;;  %vm376_vm7 = vcmp.ne.f32.partialorder %v1139_v8, %v1139_v8 }
 0x3bf   :  { %v370_v11 = vpop.f32.mrf.mxu0 }
 0x3c0   :  { %v382_v12 = vsub.f32 0.0, %v380_v10  ;;  %v371_v13 = vadd.f32 %v787_v6, %v370_v11 }
 0x3c1   :  { %v860_v14 = vpop.f32.mrf.mxu0 }
 0x3c2   :  { %v384_v15 = vmul.f32 1.442695, %v382_v12  ;;  %v381_v16 = vand.u32 2147483647, %v371_v13  ;;  %737 = vst.msk [vmem:[#allocation8 + $0x28] sm:$0xff] %vm325_vm5, %v371_v13  ;;  %v375_v42 = vmax.f32 %v371_v13, 0.0  ;;  %vm377_vm9 = vcmp.ne.f32.partialorder %v371_v13, %v371_v13 }
 0x3c4   :  { %935 = vpow2.f32 %v384_v15  ;;  %v383_v17 = vsub.f32 0.0, %v381_v16  ;;  %v908_v15 = vld [vmem:[#allocation5 + $0x60] sm:$0xff]   ;;  %v793_v16 = vld [vmem:[#allocation7 + $0x5] ss:$0 sm:$0xff] }
 0x3c6   :  { %v386_v18 = vmul.f32 1.442695, %v383_v17 }
 0x3c8   :  { %937 = vpow2.f32 %v386_v18 }
 0x3d1   :  { %v936_v19 = vpop.eup %935 }
 0x3d2   :  { %v388_v20 = vadd.f32 1.0, %v936_v19  ;;  %v391_v23 = vmul.f32 -0.5, %v936_v19  ;;  %v394_v26 = vand.u32 2147483647, %v936_v19 }
 0x3d4   :  { %939 = vlog2.f32 %v388_v20  ;;  %v392_v24 = vadd.f32 1.0, %v391_v23  ;;  %vm395_vm6 = vcmp.lt.f32.partialorder %v394_v26, 0.0004427343 }
 0x3d5   :  { %v938_v21 = vpop.eup %937 }
 0x3d6   :  { %v397_v22 = vadd.f32 1.0, %v938_v21  ;;  %v400_v25 = vmul.f32 -0.5, %v938_v21  ;;  %v393_v30 = vmul.f32 %v936_v19, %v392_v24  ;;  %v403_v34 = vand.u32 2147483647, %v938_v21 }
 0x3d8   :  { %941 = vlog2.f32 %v397_v22  ;;  %v401_v31 = vadd.f32 1.0, %v400_v25  ;;  %vm404_vm8 = vcmp.lt.f32.partialorder %v403_v34, 0.0004427343  ;;  %v909_v34 = vld [vmem:[#allocation5 + $0x38] sm:$0xff]  }
 0x3da   :  { %v402_v40 = vmul.f32 %v938_v21, %v401_v31 }
 0x3e1   :  { %v940_v27 = vpop.eup %939 }
 0x3e2   :  { %v390_v29 = vmul.f32 0.6931472, %v940_v27 }
 0x3e4   :  { %v396_v35 = vsel %vm395_vm6, %v393_v30, %v390_v29 }
 0x3e5   :  { %v942_v36 = vpop.eup %941  ;;  %v406_v38 = vadd.f32 %v396_v35, %v374_v33  ;;  %v910_v35 = vld [vmem:[#allocation5 + $0x30] sm:$0xff]  }
 0x3e6   :  { %v399_v39 = vmul.f32 0.6931472, %v942_v36  ;;  %v797_v36 = vld [vmem:[#allocation7 + $0x6] ss:$0 sm:$0xff] }
 0x3e7   :  { %v408_v41 = vsel %vm376_vm7, %v1139_v8, %v406_v38 }
 0x3e8   :  { %v410_v43 = vadd.f32 1e-08, %v408_v41  ;;  %v405_v44 = vsel %vm404_vm8, %v402_v40, %v399_v39 }
 0x3e9   :  { %v407_v45 = vadd.f32 %v405_v44, %v375_v42 }
 0x3ea   :  { %v420_v46 = vmul.f32 %v415_v37, %v410_v43  ;;  %740 = vrot.lane.b32.xlu0 %v410_v43, %s1071_s2 }
 0x3eb   :  { %v409_v48 = vsel %vm377_vm9, %v371_v13, %v407_v45 }
 0x3ec   :  { %424 = vrot.lane.b32.xlu1 %v420_v46, %s1071_s2  ;;  %v411_v49 = vadd.f32 1e-08, %v409_v48 }
 0x3ee   :  { %v421_v50 = vmul.f32 %v417_v47, %v411_v49 }
 0x3f0   :  { %426 = vrot.lane.b32.xlu1 %v421_v50, %s1071_s2 }
 0x3f4   :  { %742 = vrot.lane.b32.xlu1 %v411_v49, %s1071_s2 }
 0x45c   :  { %v741_v51 = vpop.permute.xlu0 %740 }
 0x45d   :  { %746 = vst.msk [vmem:[#allocation8 + $0x10] sm:$0xff] %vm325_vm5, %v741_v51 }
 0x45e   :  { %v425_v52 = vpop.permute.xlu1 %424 }
 0x45f   :  { %v430_v53 = vadd.f32 %v425_v52, %v1139_v8 }
 0x461   :  { %748 = vst.msk [vmem:[#allocation8 + $0x18] sm:$0xff] %vm325_vm5, %v430_v53 }
 0x462   :  { %v427_v54 = vpop.permute.xlu1 %426 }
 0x463   :  { %v431_v55 = vadd.f32 %v427_v54, %v371_v13 }
 0x465   :  { %v434_v56 = vpack.c.bf16 %v431_v55, %v430_v53  ;;  %749 = vst.msk [vmem:[#allocation8 + $0x38] sm:$0xff] %vm325_vm5, %v431_v55  ;;  %v802_v53 = vld [vmem:[#allocation7 + $0x7] ss:$0 sm:$0xff] }
 0x466   :  { %v743_v57 = vpop.permute.xlu1 %742 }
 0x467   :  { %747 = vst.msk [vmem:[#allocation8 + $0x30] sm:$0xff] %vm325_vm5, %v743_v57  ;;  %864 = vmatmul.mubr.msk.bf16.vlgmr.msra.gmra.mxu1 %vm325_vm5, %v434_v56 }
 0x468   :  { %875 = vmatprep.mubr.msk.bf16.mxu1 %vm1069_vm0, %v1068_v0  ;;  %874 = vmatpush3.bf16.msra.mxu1 %v908_v15 }
 0x527   :  { %v481_v61 = vpop.f32.mrf.mxu1 }
 0x528   :  { %v482_v62 = vadd.f32 %v789_v60, %v481_v61 }
 0x529   :  { %v865_v63 = vpop.f32.mrf.mxu1 }
 0x52a   :  { %v791_v1 = vmul.f32 -1.442695, %v482_v62 }
 0x52b   :  { %v484_v2 = vpop.f32.mrf.mxu1 }
 0x52c   :  { %943 = vpow2.f32 %v791_v1  ;;  %v485_v3 = vadd.f32 %v789_v60, %v484_v2 }
 0x52d   :  { %v866_v4 = vpop.f32.mrf.mxu1 }
 0x52e   :  { %v792_v5 = vmul.f32 -1.442695, %v485_v3 }
 0x530   :  { %945 = vpow2.f32 %v792_v5 }
 0x539   :  { %v944_v6 = vpop.eup %943 }
 0x53a   :  { %v494_v7 = vadd.f32 1.0, %v944_v6 }
 0x53c   :  { %947 = vrcp.f32 %v494_v7 }
 0x53d   :  { %v946_v8 = vpop.eup %945 }
 0x53e   :  { %v495_v9 = vadd.f32 1.0, %v946_v8 }
 0x540   :  { %949 = vrcp.f32 %v495_v9 }
 0x549   :  { %v948_v10 = vpop.eup %947 }
 0x54a   :  { %v500_v12 = vmul.f32 %v948_v10, %v482_v62 }
 0x54d   :  { %v950_v11 = vpop.eup %949 }
 0x54e   :  { %v501_v13 = vmul.f32 %v950_v11, %v485_v3 }
 0x550   :  { %v504_v14 = vpack.c.bf16 %v501_v13, %v500_v12 }
 0x552   :  { %870 = vmatmul.mubr.msk.bf16.vlgmr.msra.gmra.mxu0 %vm325_vm5, %v504_v14 }
 0x553   :  { %883 = vmatprep.mubr.msk.bf16.mxu0 %vm1069_vm0, %v1068_v0  ;;  %880 = vmatpush3.bf16.msra.mxu0 %v909_v34 }
 0x554   :  { %881 = vmatprep.subr.bf16.mxu0 %v1068_v0 }
 0x557   :  { %882 = vmatpush3.bf16.msra.mxu0 %v910_v35 }
 0x612   :  { %v551_v17 = vpop.f32.mrf.mxu0 }
 0x613   :  { %v552_v18 = vadd.f32 %v793_v16, %v551_v17 }
 0x614   :  { %v871_v19 = vpop.f32.mrf.mxu0 }
 0x615   :  { %v795_v20 = vmul.f32 -1.442695, %v552_v18 }
 0x616   :  { %v554_v21 = vpop.f32.mrf.mxu0 }
 0x617   :  { %951 = vpow2.f32 %v795_v20  ;;  %v555_v22 = vadd.f32 %v793_v16, %v554_v21 }
 0x618   :  { %v872_v23 = vpop.f32.mrf.mxu0 }
 0x619   :  { %v796_v24 = vmul.f32 -1.442695, %v555_v22 }
 0x61b   :  { %953 = vpow2.f32 %v796_v24 }
 0x624   :  { %v952_v25 = vpop.eup %951 }
 0x625   :  { %v564_v26 = vadd.f32 1.0, %v952_v25 }
 0x627   :  { %955 = vrcp.f32 %v564_v26 }
 0x628   :  { %v954_v27 = vpop.eup %953 }
 0x629   :  { %v565_v28 = vadd.f32 1.0, %v954_v27 }
 0x62b   :  { %957 = vrcp.f32 %v565_v28 }
 0x634   :  { %v956_v29 = vpop.eup %955 }
 0x635   :  { %v570_v31 = vmul.f32 %v956_v29, %v552_v18 }
 0x638   :  { %v958_v30 = vpop.eup %957 }
 0x639   :  { %v571_v32 = vmul.f32 %v958_v30, %v555_v22 }
 0x63b   :  { %v575_v33 = vpack.c.bf16 %v571_v32, %v570_v31 }
 0x63d   :  { %876 = vmatmul.mubr.msk.bf16.vlgmr.msra.gmra.mxu1 %vm257_vm3, %v575_v33 }
 0x6fd   :  { %v625_v37 = vpop.f32.mrf.mxu1 }
 0x6fe   :  { %v626_v38 = vadd.f32 %v797_v36, %v625_v37 }
 0x6ff   :  { %v877_v39 = vpop.f32.mrf.mxu1 }
 0x700   :  { %v800_v40 = vmul.f32 -1.442695, %v626_v38 }
 0x701   :  { %v628_v41 = vpop.f32.mrf.mxu1 }
 0x702   :  { %959 = vpow2.f32 %v800_v40  ;;  %v629_v42 = vadd.f32 %v797_v36, %v628_v41 }
 0x703   :  { %v878_v43 = vpop.f32.mrf.mxu1 }
 0x704   :  { %v801_v44 = vmul.f32 -1.442695, %v629_v42 }
 0x706   :  { %961 = vpow2.f32 %v801_v44 }
 0x70f   :  { %v960_v45 = vpop.eup %959 }
 0x710   :  { %v638_v46 = vadd.f32 1.0, %v960_v45 }
 0x712   :  { %963 = vrcp.f32 %v638_v46 }
 0x713   :  { %v962_v47 = vpop.eup %961 }
 0x714   :  { %v639_v48 = vadd.f32 1.0, %v962_v47 }
 0x716   :  { %965 = vrcp.f32 %v639_v48 }
 0x71f   :  { %v964_v0 = vpop.eup %963 }
 0x720   :  { %v644_v50 = vmul.f32 %v964_v0, %v626_v38 }
 0x723   :  { %v966_v49 = vpop.eup %965 }
 0x724   :  { %v645_v51 = vmul.f32 %v966_v49, %v629_v42 }
 0x726   :  { %v651_v52 = vpack.c.bf16 %v645_v51, %v644_v50 }
 0x728   :  { %884 = vmatmul.mubr.msk.bf16.vlgmr.msra.gmra.mxu0 %vm182_vm2, %v651_v52 }
 0x7e8   :  { %v707_v54 = vpop.f32.mrf.mxu0 }
 0x7e9   :  { %v708_v55 = vadd.f32 %v802_v53, %v707_v54 }
 0x7ea   :  { %v885_v56 = vpop.f32.mrf.mxu0 }
 0x7eb   :  { %v806_v57 = vmul.f32 -1.442695, %v708_v55 }
 0x7ec   :  { %v710_v58 = vpop.f32.mrf.mxu0 }
 0x7ed   :  { %967 = vpow2.f32 %v806_v57  ;;  %v711_v59 = vadd.f32 %v802_v53, %v710_v58 }
 0x7ee   :  { %v886_v60 = vpop.f32.mrf.mxu0 }
 0x7ef   :  { %v807_v61 = vmul.f32 -1.442695, %v711_v59 }
 0x7f1   :  { %969 = vpow2.f32 %v807_v61 }
 0x7fa   :  { %v968_v62 = vpop.eup %967 }
 0x7fb   :  { %v720_v63 = vadd.f32 1.0, %v968_v62 }
 0x7fd   :  { %971 = vrcp.f32 %v720_v63 }
 0x7fe   :  { %v970_v1 = vpop.eup %969 }
 0x7ff   :  { %v721_v2 = vadd.f32 1.0, %v970_v1 }
 0x801   :  { %973 = vrcp.f32 %v721_v2 }
 0x80a   :  { %v972_v3 = vpop.eup %971 }
 0x80b   :  { %734 = vst.msk [vmem:[#allocation8] sm:$0xff] %vm99_vm1, %v972_v3 }
 0x80e   :  { %v974_v4 = vpop.eup %973 }
 0x80f   :  { %735 = vst.msk [vmem:[#allocation8 + $0x20] sm:$0xff] %vm99_vm1, %v974_v4 }
 0x810   :  { %1046 = shalt.err (!%p1043_p5)
}
 0x811   :  { %s1073_s6 = smov 512   ;;  %s1074_s7 = smov 32  }
 0x812   :  { %761 = dma.vmem_to_hbm [thread:$0]  %s756_s4, 1024, %s1175_s3, [#allocation4], %s1073_s6, %s1073_s6, %s1074_s7  }
 0x813   :  { %1059 = dma.done.wait [#allocation4], 1024  }
 0x814   :  { %1060 = vsyncadd [#allocation4], 4294966272 }
 0x815   :  { %765 = vsyncpa [#allocation3], 1 }
 0x816   :  { %766 = vsyncpa [#allocation6], 1 }
 0x817   :  { %767 = vsyncpa [#allocation4], 1 }

</bundles_post_ra>
